<compile_context>
chip_gen: v5e
topology: v5e:2x2
jax: 0.10.0
libtpu: 0.0.40
codegen_flags: <defaults>
</compile_context>

<pallas_src>
import numpy as np
import jax
import jax.numpy as jnp
from jax.experimental import pallas as pl
from jax.experimental.pallas import tpu as pltpu

B = 2
L_IN = 124            # minimal input length -> final spatial dim == 1
NCB = 8               # n_channels_base
EPS = 1e-5
NEG_SLOPE = 0.2

# (Cin, Cout, K, stride) for the five Conv1d layers of the Sequential
LAYER_CFG = [
    (1,        NCB,      8, 2),
    (NCB,      2 * NCB,  7, 2),
    (2 * NCB,  4 * NCB,  7, 2),
    (4 * NCB,  8 * NCB,  7, 2),
    (8 * NCB, 16 * NCB,  3, 1),
]
BN_LAYERS = (1, 2, 3)     # conv layers followed by BatchNorm1d


def _out_len(li, k, s):
    return (li - k) // s + 1


def _seq_lens():
    lens = [L_IN]
    for (_, _, k, s) in LAYER_CFG:
        lens.append(_out_len(lens[-1], k, s))
    return lens


SEQ = _seq_lens()         # [124, 59, 27, 11, 3, 1]


def _sel_width(i):
    """Rows of the 'stride-1 conv everywhere' intermediate for layer i>=1."""
    _, _, _, s = LAYER_CFG[i]
    lin, lout = SEQ[i], SEQ[i + 1]
    return (B - 1) * lin + s * (lout - 1) + 1


# packed-vector slab layout (one (16,128) f32 array holds all small vectors)
VEC_ROWS = 16
_VEC_BIAS_ROW = [0, 1, 2, 3, 4]
_VEC_GAMMA_ROW = {1: 5, 2: 7, 3: 9}
_VEC_BETA_ROW = {1: 6, 2: 8, 3: 10}


# ----------------------------- Pallas kernel ------------------------------ #
def encoder_kernel(p1_ref, w1_ref, w2_ref, w3_ref, w4_ref, w5_ref,
                   s2_ref, s3_ref, s4_ref, s5_ref, vec_ref, o_ref):

    def mm(a, b):
        return jnp.dot(a, b, preferred_element_type=jnp.float32)

    def leaky(v):
        # slope in (0,1) -> LeakyReLU == max(v, slope*v)
        return jnp.maximum(v, NEG_SLOPE * v)

    def conv(h, sel_ref, w_ref, bias, i):
        """Conv1d layer i (i >= 1) on h of shape (B*SEQ[i], Cin)."""
        ci, co, k, _ = LAYER_CFG[i]
        width = _sel_width(i)
        # Stride-1 conv over the flattened (batch, time) rows, accumulated
        # one dense tap at a time.  Weight tap slices start at kk*ci which is
        # always a multiple of 8 (sublane-aligned); activation slices are
        # static value slices.
        full = mm(h[0:width, :], w_ref[0:ci, :])
        for kk in range(1, k):
            full = full + mm(h[kk:kk + width, :],
                             w_ref[kk * ci:(kk + 1) * ci, :])
        # A 0/1 row-selection matmul picks the (b, stride*t) rows; rows that
        # straddle the batch boundary are never selected.
        return mm(sel_ref[...], full) + bias                 # (B*Lout, Cout)

    def batchnorm(y, gamma, beta, n):
        # training-mode BatchNorm1d: per-channel batch mean / biased variance
        mean = jnp.sum(y, axis=0, keepdims=True) / n
        d = y - mean
        var = jnp.sum(d * d, axis=0, keepdims=True) / n
        inv = jax.lax.rsqrt(var + EPS)
        return d * (inv * gamma) + beta

    vec = vec_ref[...]
    b1 = vec[0:1, 0:8]
    b2 = vec[1:2, 0:16]
    b3 = vec[2:3, 0:32]
    b4 = vec[3:4, 0:64]
    b5 = vec[4:5, 0:128]
    g2, be2 = vec[5:6, 0:16], vec[6:7, 0:16]
    g3, be3 = vec[7:8, 0:32], vec[8:9, 0:32]
    g4, be4 = vec[9:10, 0:64], vec[10:11, 0:64]

    # layer 1: Conv1d(1->8, k=8, s=2) + LeakyReLU  (im2col patches precomputed)
    h = leaky(mm(p1_ref[...], w1_ref[...]) + b1)                   # (118, 8)
    # layer 2: Conv1d(8->16, k=7, s=2) + BN + LeakyReLU
    h = conv(h, s2_ref, w2_ref, b2, 1)                             # (54, 16)
    h = leaky(batchnorm(h, g2, be2, float(B * SEQ[2])))
    # layer 3: Conv1d(16->32, k=7, s=2) + BN + LeakyReLU
    h = conv(h, s3_ref, w3_ref, b3, 2)                             # (22, 32)
    h = leaky(batchnorm(h, g3, be3, float(B * SEQ[3])))
    # layer 4: Conv1d(32->64, k=7, s=2) + BN + LeakyReLU
    h = conv(h, s4_ref, w4_ref, b4, 3)                             # (6, 64)
    h = leaky(batchnorm(h, g4, be4, float(B * SEQ[4])))
    # layer 5: Conv1d(64->128, k=3, s=1) + Tanh  (Lout == 1, already squeezed)
    h = conv(h, s5_ref, w5_ref, b5, 4)                             # (2, 128)
    o_ref[...] = jnp.tanh(h)


# ------------------------------- glue / wrapper ---------------------------- #
def init_params(key):
    params = {"conv": [], "bn": {}}
    for i, (ci, co, k, s) in enumerate(LAYER_CFG):
        key, kw, kb = jax.random.split(key, 3)
        bound = 1.0 / np.sqrt(ci * k)
        w = jax.random.uniform(kw, (co, ci, k), jnp.float32, -bound, bound)
        b = jax.random.uniform(kb, (co,), jnp.float32, -bound, bound)
        params["conv"].append((w, b))
        if i in BN_LAYERS:
            key, kg, kbe = jax.random.split(key, 3)
            g = 1.0 + 0.1 * jax.random.uniform(kg, (co,), jnp.float32, -1.0, 1.0)
            be = 0.1 * jax.random.uniform(kbe, (co,), jnp.float32, -1.0, 1.0)
            params["bn"][i] = (g, be)
    return params


def pack_params(params):
    """One-time packing of PyTorch-layout parameters into kernel operands."""
    ws = []
    for i, (ci, co, k, s) in enumerate(LAYER_CFG):
        w, _ = params["conv"][i]
        # (Cout, Cin, K) -> (K*Cin, Cout); row order (kk, ci) so the kernel's
        # per-tap slice w2d[kk*ci:(kk+1)*ci, :] is exactly w[:, :, kk].T
        ws.append(jnp.transpose(w, (2, 1, 0)).reshape(k * ci, co))

    sels = []
    for i in range(1, 5):
        _, _, _, s = LAYER_CFG[i]
        lin, lout = SEQ[i], SEQ[i + 1]
        sel = np.zeros((B * lout, _sel_width(i)), np.float32)
        for b in range(B):
            for t in range(lout):
                sel[b * lout + t, b * lin + s * t] = 1.0
        sels.append(jnp.asarray(sel))

    vec = jnp.zeros((VEC_ROWS, 128), jnp.float32)
    for i, (ci, co, k, s) in enumerate(LAYER_CFG):
        vec = vec.at[_VEC_BIAS_ROW[i], :co].set(params["conv"][i][1])
    for i in BN_LAYERS:
        g, be = params["bn"][i]
        co = LAYER_CFG[i][1]
        vec = vec.at[_VEC_GAMMA_ROW[i], :co].set(g)
        vec = vec.at[_VEC_BETA_ROW[i], :co].set(be)

    return tuple(ws) + tuple(sels) + (vec,)


def _im2col_input(x):
    """(B, 124) input -> (B*59, 8) im2col patches for the first conv."""
    _, _, k, s = LAYER_CFG[0]
    lout = SEQ[1]
    cols = [x[:, kk:kk + s * (lout - 1) + 1:s] for kk in range(k)]  # (B,59) each
    return jnp.stack(cols, axis=-1).reshape(B * lout, k)


def _flops_estimate():
    total = 2 * (B * SEQ[1]) * LAYER_CFG[0][2] * LAYER_CFG[0][1]
    for i in range(1, 5):
        ci, co, k, _ = LAYER_CFG[i]
        width = _sel_width(i)
        total += 2 * width * (k * ci) * co            # dense conv taps
        total += 2 * (B * SEQ[i + 1]) * width * co    # selection matmul
    return total


def _bytes_estimate():
    n = B * SEQ[1] * LAYER_CFG[0][2]                  # layer-1 patches
    for (ci, co, k, _) in LAYER_CFG:
        n += k * ci * co                              # packed weights
    for i in range(1, 5):
        n += (B * SEQ[i + 1]) * _sel_width(i)         # selection matrices
    n += VEC_ROWS * 128                               # packed bias/gamma/beta
    n += B * 16 * NCB                                 # output
    return 4 * n


def encoder_forward(x, packed):
    operands = (_im2col_input(x),) + tuple(packed)
    vmem = pl.BlockSpec(memory_space=pltpu.MemorySpace.VMEM)
    return pl.pallas_call(
        encoder_kernel,
        out_shape=jax.ShapeDtypeStruct((B, 16 * NCB), jnp.float32),
        in_specs=[vmem] * len(operands),
        out_specs=vmem,
        cost_estimate=pl.CostEstimate(
            flops=_flops_estimate(),
            transcendentals=512,
            bytes_accessed=_bytes_estimate()),
    )(*operands)


# pure-JAX reference of the PyTorch forward (for a correctness check)
def reference_forward(x, params):
    h = x[:, None, :]                                        # (B, 1, L) ~ NCW
    for i, (ci, co, k, s) in enumerate(LAYER_CFG):
        w, b = params["conv"][i]
        h = jax.lax.conv_general_dilated(
            h, w, window_strides=(s,), padding="VALID",
            dimension_numbers=("NCH", "OIH", "NCH"))
        h = h + b[None, :, None]
        if i in BN_LAYERS:
            g, be = params["bn"][i]
            mean = jnp.mean(h, axis=(0, 2), keepdims=True)
            var = jnp.mean((h - mean) ** 2, axis=(0, 2), keepdims=True)
            h = (h - mean) / jnp.sqrt(var + EPS)
            h = h * g[None, :, None] + be[None, :, None]
        if i < 4:
            h = jnp.where(h > 0, h, NEG_SLOPE * h)
        else:
            h = jnp.tanh(h)
    return jnp.squeeze(h, axis=2)


if __name__ == "__main__":
    key = jax.random.PRNGKey(0)
    kx, kp = jax.random.split(key)
    # PyTorch forward does x.view(-1, 1, x.shape[1]); x is (B, L) with L=124
    x = jax.random.normal(kx, (B, L_IN), dtype=jnp.float32)
    params = init_params(kp)

    packed = pack_params(params)          # one-time packing, off the hot path
    fwd = jax.jit(encoder_forward)        # wrapper is end-to-end jittable
    out = jax.block_until_ready(fwd(x, packed))

    ref = reference_forward(x, params)
    assert out.shape == (B, 16 * NCB)
    np.testing.assert_allclose(np.asarray(out), np.asarray(ref),
                               atol=2e-3, rtol=2e-3)
    print("KERNEL_OK")
</pallas_src>

<mosaic_0001>
module attributes {stable_mosaic.version = 11 : i64} {
  func.func @encoder_kernel(%arg0: memref<118x8xf32, #tpu.memory_space<vmem>>, %arg1: memref<8x8xf32, #tpu.memory_space<vmem>>, %arg2: memref<56x16xf32, #tpu.memory_space<vmem>>, %arg3: memref<112x32xf32, #tpu.memory_space<vmem>>, %arg4: memref<224x64xf32, #tpu.memory_space<vmem>>, %arg5: memref<192x128xf32, #tpu.memory_space<vmem>>, %arg6: memref<54x112xf32, #tpu.memory_space<vmem>>, %arg7: memref<22x48xf32, #tpu.memory_space<vmem>>, %arg8: memref<6x16xf32, #tpu.memory_space<vmem>>, %arg9: memref<2x4xf32, #tpu.memory_space<vmem>>, %arg10: memref<16x128xf32, #tpu.memory_space<vmem>>, %arg11: memref<2x128xf32, #tpu.memory_space<vmem>>) attributes {dimension_semantics = [], scalar_prefetch = 0 : i64, scratch_operands = 0 : i64, tpu.core_type = #tpu.core_type<tc>} {
    %c0 = arith.constant 0 : index
    %c0_0 = arith.constant 0 : index
    %0 = vector.load %arg10[%c0, %c0_0] : memref<16x128xf32, #tpu.memory_space<vmem>>, vector<16x128xf32>
    %1 = vector.extract_strided_slice %0 {offsets = [0, 0], sizes = [1, 8], strides = [1, 1]} : vector<16x128xf32> to vector<1x8xf32>
    %2 = vector.extract_strided_slice %0 {offsets = [1, 0], sizes = [1, 16], strides = [1, 1]} : vector<16x128xf32> to vector<1x16xf32>
    %3 = vector.extract_strided_slice %0 {offsets = [2, 0], sizes = [1, 32], strides = [1, 1]} : vector<16x128xf32> to vector<1x32xf32>
    %4 = vector.extract_strided_slice %0 {offsets = [3, 0], sizes = [1, 64], strides = [1, 1]} : vector<16x128xf32> to vector<1x64xf32>
    %5 = vector.extract_strided_slice %0 {offsets = [4, 0], sizes = [1, 128], strides = [1, 1]} : vector<16x128xf32> to vector<1x128xf32>
    %6 = vector.extract_strided_slice %0 {offsets = [5, 0], sizes = [1, 16], strides = [1, 1]} : vector<16x128xf32> to vector<1x16xf32>
    %7 = vector.extract_strided_slice %0 {offsets = [6, 0], sizes = [1, 16], strides = [1, 1]} : vector<16x128xf32> to vector<1x16xf32>
    %8 = vector.extract_strided_slice %0 {offsets = [7, 0], sizes = [1, 32], strides = [1, 1]} : vector<16x128xf32> to vector<1x32xf32>
    %9 = vector.extract_strided_slice %0 {offsets = [8, 0], sizes = [1, 32], strides = [1, 1]} : vector<16x128xf32> to vector<1x32xf32>
    %10 = vector.extract_strided_slice %0 {offsets = [9, 0], sizes = [1, 64], strides = [1, 1]} : vector<16x128xf32> to vector<1x64xf32>
    %11 = vector.extract_strided_slice %0 {offsets = [10, 0], sizes = [1, 64], strides = [1, 1]} : vector<16x128xf32> to vector<1x64xf32>
    %c0_1 = arith.constant 0 : index
    %c0_2 = arith.constant 0 : index
    %12 = vector.load %arg0[%c0_1, %c0_2] : memref<118x8xf32, #tpu.memory_space<vmem>>, vector<118x8xf32>
    %c0_3 = arith.constant 0 : index
    %c0_4 = arith.constant 0 : index
    %13 = vector.load %arg1[%c0_3, %c0_4] : memref<8x8xf32, #tpu.memory_space<vmem>>, vector<8x8xf32>
    %cst = arith.constant dense<0.000000e+00> : vector<118x8xf32>
    %14 = tpu.matmul %12, %13, %cst {dimension_numbers = #tpu.dot_dimension_numbers<[1], [0], [0], [1], [0, 0, 1, 1], [], []>} : vector<118x8xf32>, vector<8x8xf32>, vector<118x8xf32> -> vector<118x8xf32>
    %15 = vector.broadcast %1 : vector<1x8xf32> to vector<118x8xf32>
    %16 = arith.addf %14, %15 : vector<118x8xf32>
    %cst_5 = arith.constant 2.000000e-01 : f32
    %17 = vector.broadcast %cst_5 : f32 to vector<118x8xf32>
    %18 = arith.mulf %17, %16 : vector<118x8xf32>
    %19 = arith.maximumf %16, %18 : vector<118x8xf32>
    %20 = vector.extract_strided_slice %19 {offsets = [0, 0], sizes = [112, 8], strides = [1, 1]} : vector<118x8xf32> to vector<112x8xf32>
    %c0_6 = arith.constant 0 : index
    %c0_7 = arith.constant 0 : index
    %21 = vector.load %arg2[%c0_6, %c0_7] : memref<56x16xf32, #tpu.memory_space<vmem>>, vector<8x16xf32>
    %cst_8 = arith.constant dense<0.000000e+00> : vector<112x16xf32>
    %22 = tpu.matmul %20, %21, %cst_8 {dimension_numbers = #tpu.dot_dimension_numbers<[1], [0], [0], [1], [0, 0, 1, 1], [], []>} : vector<112x8xf32>, vector<8x16xf32>, vector<112x16xf32> -> vector<112x16xf32>
    %23 = vector.extract_strided_slice %19 {offsets = [1, 0], sizes = [112, 8], strides = [1, 1]} : vector<118x8xf32> to vector<112x8xf32>
    %c8 = arith.constant 8 : index
    %c0_9 = arith.constant 0 : index
    %24 = vector.load %arg2[%c8, %c0_9] : memref<56x16xf32, #tpu.memory_space<vmem>>, vector<8x16xf32>
    %cst_10 = arith.constant dense<0.000000e+00> : vector<112x16xf32>
    %25 = tpu.matmul %23, %24, %cst_10 {dimension_numbers = #tpu.dot_dimension_numbers<[1], [0], [0], [1], [0, 0, 1, 1], [], []>} : vector<112x8xf32>, vector<8x16xf32>, vector<112x16xf32> -> vector<112x16xf32>
    %26 = arith.addf %22, %25 : vector<112x16xf32>
    %27 = vector.extract_strided_slice %19 {offsets = [2, 0], sizes = [112, 8], strides = [1, 1]} : vector<118x8xf32> to vector<112x8xf32>
    %c16 = arith.constant 16 : index
    %c0_11 = arith.constant 0 : index
    %28 = vector.load %arg2[%c16, %c0_11] : memref<56x16xf32, #tpu.memory_space<vmem>>, vector<8x16xf32>
    %cst_12 = arith.constant dense<0.000000e+00> : vector<112x16xf32>
    %29 = tpu.matmul %27, %28, %cst_12 {dimension_numbers = #tpu.dot_dimension_numbers<[1], [0], [0], [1], [0, 0, 1, 1], [], []>} : vector<112x8xf32>, vector<8x16xf32>, vector<112x16xf32> -> vector<112x16xf32>
    %30 = arith.addf %26, %29 : vector<112x16xf32>
    %31 = vector.extract_strided_slice %19 {offsets = [3, 0], sizes = [112, 8], strides = [1, 1]} : vector<118x8xf32> to vector<112x8xf32>
    %c24 = arith.constant 24 : index
    %c0_13 = arith.constant 0 : index
    %32 = vector.load %arg2[%c24, %c0_13] : memref<56x16xf32, #tpu.memory_space<vmem>>, vector<8x16xf32>
    %cst_14 = arith.constant dense<0.000000e+00> : vector<112x16xf32>
    %33 = tpu.matmul %31, %32, %cst_14 {dimension_numbers = #tpu.dot_dimension_numbers<[1], [0], [0], [1], [0, 0, 1, 1], [], []>} : vector<112x8xf32>, vector<8x16xf32>, vector<112x16xf32> -> vector<112x16xf32>
    %34 = arith.addf %30, %33 : vector<112x16xf32>
    %35 = vector.extract_strided_slice %19 {offsets = [4, 0], sizes = [112, 8], strides = [1, 1]} : vector<118x8xf32> to vector<112x8xf32>
    %c32 = arith.constant 32 : index
    %c0_15 = arith.constant 0 : index
    %36 = vector.load %arg2[%c32, %c0_15] : memref<56x16xf32, #tpu.memory_space<vmem>>, vector<8x16xf32>
    %cst_16 = arith.constant dense<0.000000e+00> : vector<112x16xf32>
    %37 = tpu.matmul %35, %36, %cst_16 {dimension_numbers = #tpu.dot_dimension_numbers<[1], [0], [0], [1], [0, 0, 1, 1], [], []>} : vector<112x8xf32>, vector<8x16xf32>, vector<112x16xf32> -> vector<112x16xf32>
    %38 = arith.addf %34, %37 : vector<112x16xf32>
    %39 = vector.extract_strided_slice %19 {offsets = [5, 0], sizes = [112, 8], strides = [1, 1]} : vector<118x8xf32> to vector<112x8xf32>
    %c40 = arith.constant 40 : index
    %c0_17 = arith.constant 0 : index
    %40 = vector.load %arg2[%c40, %c0_17] : memref<56x16xf32, #tpu.memory_space<vmem>>, vector<8x16xf32>
    %cst_18 = arith.constant dense<0.000000e+00> : vector<112x16xf32>
    %41 = tpu.matmul %39, %40, %cst_18 {dimension_numbers = #tpu.dot_dimension_numbers<[1], [0], [0], [1], [0, 0, 1, 1], [], []>} : vector<112x8xf32>, vector<8x16xf32>, vector<112x16xf32> -> vector<112x16xf32>
    %42 = arith.addf %38, %41 : vector<112x16xf32>
    %43 = vector.extract_strided_slice %19 {offsets = [6, 0], sizes = [112, 8], strides = [1, 1]} : vector<118x8xf32> to vector<112x8xf32>
    %c48 = arith.constant 48 : index
    %c0_19 = arith.constant 0 : index
    %44 = vector.load %arg2[%c48, %c0_19] : memref<56x16xf32, #tpu.memory_space<vmem>>, vector<8x16xf32>
    %cst_20 = arith.constant dense<0.000000e+00> : vector<112x16xf32>
    %45 = tpu.matmul %43, %44, %cst_20 {dimension_numbers = #tpu.dot_dimension_numbers<[1], [0], [0], [1], [0, 0, 1, 1], [], []>} : vector<112x8xf32>, vector<8x16xf32>, vector<112x16xf32> -> vector<112x16xf32>
    %46 = arith.addf %42, %45 : vector<112x16xf32>
    %c0_21 = arith.constant 0 : index
    %c0_22 = arith.constant 0 : index
    %47 = vector.load %arg6[%c0_21, %c0_22] : memref<54x112xf32, #tpu.memory_space<vmem>>, vector<54x112xf32>
    %cst_23 = arith.constant dense<0.000000e+00> : vector<54x16xf32>
    %48 = tpu.matmul %47, %46, %cst_23 {dimension_numbers = #tpu.dot_dimension_numbers<[1], [0], [0], [1], [0, 0, 1, 1], [], []>} : vector<54x112xf32>, vector<112x16xf32>, vector<54x16xf32> -> vector<54x16xf32>
    %49 = vector.broadcast %2 : vector<1x16xf32> to vector<54x16xf32>
    %50 = arith.addf %48, %49 : vector<54x16xf32>
    %cst_24 = arith.constant dense<0.000000e+00> : vector<16xf32>
    %51 = vector.multi_reduction <add>, %50, %cst_24 [0] : vector<54x16xf32> to vector<16xf32>
    %52 = vector.shape_cast %51 : vector<16xf32> to vector<1x16xf32>
    %cst_25 = arith.constant 5.400000e+01 : f32
    %53 = vector.broadcast %cst_25 : f32 to vector<1x16xf32>
    %54 = arith.divf %52, %53 : vector<1x16xf32>
    %55 = vector.broadcast %54 : vector<1x16xf32> to vector<54x16xf32>
    %56 = arith.subf %50, %55 : vector<54x16xf32>
    %57 = arith.mulf %56, %56 : vector<54x16xf32>
    %cst_26 = arith.constant dense<0.000000e+00> : vector<16xf32>
    %58 = vector.multi_reduction <add>, %57, %cst_26 [0] : vector<54x16xf32> to vector<16xf32>
    %59 = vector.shape_cast %58 : vector<16xf32> to vector<1x16xf32>
    %cst_27 = arith.constant 5.400000e+01 : f32
    %60 = vector.broadcast %cst_27 : f32 to vector<1x16xf32>
    %61 = arith.divf %59, %60 : vector<1x16xf32>
    %cst_28 = arith.constant 9.99999974E-6 : f32
    %62 = vector.broadcast %cst_28 : f32 to vector<1x16xf32>
    %63 = arith.addf %61, %62 : vector<1x16xf32>
    %64 = math.rsqrt %63 : vector<1x16xf32>
    %65 = arith.mulf %64, %6 : vector<1x16xf32>
    %66 = vector.broadcast %65 : vector<1x16xf32> to vector<54x16xf32>
    %67 = arith.mulf %56, %66 : vector<54x16xf32>
    %68 = vector.broadcast %7 : vector<1x16xf32> to vector<54x16xf32>
    %69 = arith.addf %67, %68 : vector<54x16xf32>
    %cst_29 = arith.constant 2.000000e-01 : f32
    %70 = vector.broadcast %cst_29 : f32 to vector<54x16xf32>
    %71 = arith.mulf %70, %69 : vector<54x16xf32>
    %72 = arith.maximumf %69, %71 : vector<54x16xf32>
    %73 = vector.extract_strided_slice %72 {offsets = [0, 0], sizes = [48, 16], strides = [1, 1]} : vector<54x16xf32> to vector<48x16xf32>
    %c0_30 = arith.constant 0 : index
    %c0_31 = arith.constant 0 : index
    %74 = vector.load %arg3[%c0_30, %c0_31] : memref<112x32xf32, #tpu.memory_space<vmem>>, vector<16x32xf32>
    %cst_32 = arith.constant dense<0.000000e+00> : vector<48x32xf32>
    %75 = tpu.matmul %73, %74, %cst_32 {dimension_numbers = #tpu.dot_dimension_numbers<[1], [0], [0], [1], [0, 0, 1, 1], [], []>} : vector<48x16xf32>, vector<16x32xf32>, vector<48x32xf32> -> vector<48x32xf32>
    %76 = vector.extract_strided_slice %72 {offsets = [1, 0], sizes = [48, 16], strides = [1, 1]} : vector<54x16xf32> to vector<48x16xf32>
    %c16_33 = arith.constant 16 : index
    %c0_34 = arith.constant 0 : index
    %77 = vector.load %arg3[%c16_33, %c0_34] : memref<112x32xf32, #tpu.memory_space<vmem>>, vector<16x32xf32>
    %cst_35 = arith.constant dense<0.000000e+00> : vector<48x32xf32>
    %78 = tpu.matmul %76, %77, %cst_35 {dimension_numbers = #tpu.dot_dimension_numbers<[1], [0], [0], [1], [0, 0, 1, 1], [], []>} : vector<48x16xf32>, vector<16x32xf32>, vector<48x32xf32> -> vector<48x32xf32>
    %79 = arith.addf %75, %78 : vector<48x32xf32>
    %80 = vector.extract_strided_slice %72 {offsets = [2, 0], sizes = [48, 16], strides = [1, 1]} : vector<54x16xf32> to vector<48x16xf32>
    %c32_36 = arith.constant 32 : index
    %c0_37 = arith.constant 0 : index
    %81 = vector.load %arg3[%c32_36, %c0_37] : memref<112x32xf32, #tpu.memory_space<vmem>>, vector<16x32xf32>
    %cst_38 = arith.constant dense<0.000000e+00> : vector<48x32xf32>
    %82 = tpu.matmul %80, %81, %cst_38 {dimension_numbers = #tpu.dot_dimension_numbers<[1], [0], [0], [1], [0, 0, 1, 1], [], []>} : vector<48x16xf32>, vector<16x32xf32>, vector<48x32xf32> -> vector<48x32xf32>
    %83 = arith.addf %79, %82 : vector<48x32xf32>
    %84 = vector.extract_strided_slice %72 {offsets = [3, 0], sizes = [48, 16], strides = [1, 1]} : vector<54x16xf32> to vector<48x16xf32>
    %c48_39 = arith.constant 48 : index
    %c0_40 = arith.constant 0 : index
    %85 = vector.load %arg3[%c48_39, %c0_40] : memref<112x32xf32, #tpu.memory_space<vmem>>, vector<16x32xf32>
    %cst_41 = arith.constant dense<0.000000e+00> : vector<48x32xf32>
    %86 = tpu.matmul %84, %85, %cst_41 {dimension_numbers = #tpu.dot_dimension_numbers<[1], [0], [0], [1], [0, 0, 1, 1], [], []>} : vector<48x16xf32>, vector<16x32xf32>, vector<48x32xf32> -> vector<48x32xf32>
    %87 = arith.addf %83, %86 : vector<48x32xf32>
    %88 = vector.extract_strided_slice %72 {offsets = [4, 0], sizes = [48, 16], strides = [1, 1]} : vector<54x16xf32> to vector<48x16xf32>
    %c64 = arith.constant 64 : index
    %c0_42 = arith.constant 0 : index
    %89 = vector.load %arg3[%c64, %c0_42] : memref<112x32xf32, #tpu.memory_space<vmem>>, vector<16x32xf32>
    %cst_43 = arith.constant dense<0.000000e+00> : vector<48x32xf32>
    %90 = tpu.matmul %88, %89, %cst_43 {dimension_numbers = #tpu.dot_dimension_numbers<[1], [0], [0], [1], [0, 0, 1, 1], [], []>} : vector<48x16xf32>, vector<16x32xf32>, vector<48x32xf32> -> vector<48x32xf32>
    %91 = arith.addf %87, %90 : vector<48x32xf32>
    %92 = vector.extract_strided_slice %72 {offsets = [5, 0], sizes = [48, 16], strides = [1, 1]} : vector<54x16xf32> to vector<48x16xf32>
    %c80 = arith.constant 80 : index
    %c0_44 = arith.constant 0 : index
    %93 = vector.load %arg3[%c80, %c0_44] : memref<112x32xf32, #tpu.memory_space<vmem>>, vector<16x32xf32>
    %cst_45 = arith.constant dense<0.000000e+00> : vector<48x32xf32>
    %94 = tpu.matmul %92, %93, %cst_45 {dimension_numbers = #tpu.dot_dimension_numbers<[1], [0], [0], [1], [0, 0, 1, 1], [], []>} : vector<48x16xf32>, vector<16x32xf32>, vector<48x32xf32> -> vector<48x32xf32>
    %95 = arith.addf %91, %94 : vector<48x32xf32>
    %96 = vector.extract_strided_slice %72 {offsets = [6, 0], sizes = [48, 16], strides = [1, 1]} : vector<54x16xf32> to vector<48x16xf32>
    %c96 = arith.constant 96 : index
    %c0_46 = arith.constant 0 : index
    %97 = vector.load %arg3[%c96, %c0_46] : memref<112x32xf32, #tpu.memory_space<vmem>>, vector<16x32xf32>
    %cst_47 = arith.constant dense<0.000000e+00> : vector<48x32xf32>
    %98 = tpu.matmul %96, %97, %cst_47 {dimension_numbers = #tpu.dot_dimension_numbers<[1], [0], [0], [1], [0, 0, 1, 1], [], []>} : vector<48x16xf32>, vector<16x32xf32>, vector<48x32xf32> -> vector<48x32xf32>
    %99 = arith.addf %95, %98 : vector<48x32xf32>
    %c0_48 = arith.constant 0 : index
    %c0_49 = arith.constant 0 : index
    %100 = vector.load %arg7[%c0_48, %c0_49] : memref<22x48xf32, #tpu.memory_space<vmem>>, vector<22x48xf32>
    %cst_50 = arith.constant dense<0.000000e+00> : vector<22x32xf32>
    %101 = tpu.matmul %100, %99, %cst_50 {dimension_numbers = #tpu.dot_dimension_numbers<[1], [0], [0], [1], [0, 0, 1, 1], [], []>} : vector<22x48xf32>, vector<48x32xf32>, vector<22x32xf32> -> vector<22x32xf32>
    %102 = vector.broadcast %3 : vector<1x32xf32> to vector<22x32xf32>
    %103 = arith.addf %101, %102 : vector<22x32xf32>
    %cst_51 = arith.constant dense<0.000000e+00> : vector<32xf32>
    %104 = vector.multi_reduction <add>, %103, %cst_51 [0] : vector<22x32xf32> to vector<32xf32>
    %105 = vector.shape_cast %104 : vector<32xf32> to vector<1x32xf32>
    %cst_52 = arith.constant 2.200000e+01 : f32
    %106 = vector.broadcast %cst_52 : f32 to vector<1x32xf32>
    %107 = arith.divf %105, %106 : vector<1x32xf32>
    %108 = vector.broadcast %107 : vector<1x32xf32> to vector<22x32xf32>
    %109 = arith.subf %103, %108 : vector<22x32xf32>
    %110 = arith.mulf %109, %109 : vector<22x32xf32>
    %cst_53 = arith.constant dense<0.000000e+00> : vector<32xf32>
    %111 = vector.multi_reduction <add>, %110, %cst_53 [0] : vector<22x32xf32> to vector<32xf32>
    %112 = vector.shape_cast %111 : vector<32xf32> to vector<1x32xf32>
    %cst_54 = arith.constant 2.200000e+01 : f32
    %113 = vector.broadcast %cst_54 : f32 to vector<1x32xf32>
    %114 = arith.divf %112, %113 : vector<1x32xf32>
    %cst_55 = arith.constant 9.99999974E-6 : f32
    %115 = vector.broadcast %cst_55 : f32 to vector<1x32xf32>
    %116 = arith.addf %114, %115 : vector<1x32xf32>
    %117 = math.rsqrt %116 : vector<1x32xf32>
    %118 = arith.mulf %117, %8 : vector<1x32xf32>
    %119 = vector.broadcast %118 : vector<1x32xf32> to vector<22x32xf32>
    %120 = arith.mulf %109, %119 : vector<22x32xf32>
    %121 = vector.broadcast %9 : vector<1x32xf32> to vector<22x32xf32>
    %122 = arith.addf %120, %121 : vector<22x32xf32>
    %cst_56 = arith.constant 2.000000e-01 : f32
    %123 = vector.broadcast %cst_56 : f32 to vector<22x32xf32>
    %124 = arith.mulf %123, %122 : vector<22x32xf32>
    %125 = arith.maximumf %122, %124 : vector<22x32xf32>
    %126 = vector.extract_strided_slice %125 {offsets = [0, 0], sizes = [16, 32], strides = [1, 1]} : vector<22x32xf32> to vector<16x32xf32>
    %c0_57 = arith.constant 0 : index
    %c0_58 = arith.constant 0 : index
    %127 = vector.load %arg4[%c0_57, %c0_58] : memref<224x64xf32, #tpu.memory_space<vmem>>, vector<32x64xf32>
    %cst_59 = arith.constant dense<0.000000e+00> : vector<16x64xf32>
    %128 = tpu.matmul %126, %127, %cst_59 {dimension_numbers = #tpu.dot_dimension_numbers<[1], [0], [0], [1], [0, 0, 1, 1], [], []>} : vector<16x32xf32>, vector<32x64xf32>, vector<16x64xf32> -> vector<16x64xf32>
    %129 = vector.extract_strided_slice %125 {offsets = [1, 0], sizes = [16, 32], strides = [1, 1]} : vector<22x32xf32> to vector<16x32xf32>
    %c32_60 = arith.constant 32 : index
    %c0_61 = arith.constant 0 : index
    %130 = vector.load %arg4[%c32_60, %c0_61] : memref<224x64xf32, #tpu.memory_space<vmem>>, vector<32x64xf32>
    %cst_62 = arith.constant dense<0.000000e+00> : vector<16x64xf32>
    %131 = tpu.matmul %129, %130, %cst_62 {dimension_numbers = #tpu.dot_dimension_numbers<[1], [0], [0], [1], [0, 0, 1, 1], [], []>} : vector<16x32xf32>, vector<32x64xf32>, vector<16x64xf32> -> vector<16x64xf32>
    %132 = arith.addf %128, %131 : vector<16x64xf32>
    %133 = vector.extract_strided_slice %125 {offsets = [2, 0], sizes = [16, 32], strides = [1, 1]} : vector<22x32xf32> to vector<16x32xf32>
    %c64_63 = arith.constant 64 : index
    %c0_64 = arith.constant 0 : index
    %134 = vector.load %arg4[%c64_63, %c0_64] : memref<224x64xf32, #tpu.memory_space<vmem>>, vector<32x64xf32>
    %cst_65 = arith.constant dense<0.000000e+00> : vector<16x64xf32>
    %135 = tpu.matmul %133, %134, %cst_65 {dimension_numbers = #tpu.dot_dimension_numbers<[1], [0], [0], [1], [0, 0, 1, 1], [], []>} : vector<16x32xf32>, vector<32x64xf32>, vector<16x64xf32> -> vector<16x64xf32>
    %136 = arith.addf %132, %135 : vector<16x64xf32>
    %137 = vector.extract_strided_slice %125 {offsets = [3, 0], sizes = [16, 32], strides = [1, 1]} : vector<22x32xf32> to vector<16x32xf32>
    %c96_66 = arith.constant 96 : index
    %c0_67 = arith.constant 0 : index
    %138 = vector.load %arg4[%c96_66, %c0_67] : memref<224x64xf32, #tpu.memory_space<vmem>>, vector<32x64xf32>
    %cst_68 = arith.constant dense<0.000000e+00> : vector<16x64xf32>
    %139 = tpu.matmul %137, %138, %cst_68 {dimension_numbers = #tpu.dot_dimension_numbers<[1], [0], [0], [1], [0, 0, 1, 1], [], []>} : vector<16x32xf32>, vector<32x64xf32>, vector<16x64xf32> -> vector<16x64xf32>
    %140 = arith.addf %136, %139 : vector<16x64xf32>
    %141 = vector.extract_strided_slice %125 {offsets = [4, 0], sizes = [16, 32], strides = [1, 1]} : vector<22x32xf32> to vector<16x32xf32>
    %c128 = arith.constant 128 : index
    %c0_69 = arith.constant 0 : index
    %142 = vector.load %arg4[%c128, %c0_69] : memref<224x64xf32, #tpu.memory_space<vmem>>, vector<32x64xf32>
    %cst_70 = arith.constant dense<0.000000e+00> : vector<16x64xf32>
    %143 = tpu.matmul %141, %142, %cst_70 {dimension_numbers = #tpu.dot_dimension_numbers<[1], [0], [0], [1], [0, 0, 1, 1], [], []>} : vector<16x32xf32>, vector<32x64xf32>, vector<16x64xf32> -> vector<16x64xf32>
    %144 = arith.addf %140, %143 : vector<16x64xf32>
    %145 = vector.extract_strided_slice %125 {offsets = [5, 0], sizes = [16, 32], strides = [1, 1]} : vector<22x32xf32> to vector<16x32xf32>
    %c160 = arith.constant 160 : index
    %c0_71 = arith.constant 0 : index
    %146 = vector.load %arg4[%c160, %c0_71] : memref<224x64xf32, #tpu.memory_space<vmem>>, vector<32x64xf32>
    %cst_72 = arith.constant dense<0.000000e+00> : vector<16x64xf32>
    %147 = tpu.matmul %145, %146, %cst_72 {dimension_numbers = #tpu.dot_dimension_numbers<[1], [0], [0], [1], [0, 0, 1, 1], [], []>} : vector<16x32xf32>, vector<32x64xf32>, vector<16x64xf32> -> vector<16x64xf32>
    %148 = arith.addf %144, %147 : vector<16x64xf32>
    %149 = vector.extract_strided_slice %125 {offsets = [6, 0], sizes = [16, 32], strides = [1, 1]} : vector<22x32xf32> to vector<16x32xf32>
    %c192 = arith.constant 192 : index
    %c0_73 = arith.constant 0 : index
    %150 = vector.load %arg4[%c192, %c0_73] : memref<224x64xf32, #tpu.memory_space<vmem>>, vector<32x64xf32>
    %cst_74 = arith.constant dense<0.000000e+00> : vector<16x64xf32>
    %151 = tpu.matmul %149, %150, %cst_74 {dimension_numbers = #tpu.dot_dimension_numbers<[1], [0], [0], [1], [0, 0, 1, 1], [], []>} : vector<16x32xf32>, vector<32x64xf32>, vector<16x64xf32> -> vector<16x64xf32>
    %152 = arith.addf %148, %151 : vector<16x64xf32>
    %c0_75 = arith.constant 0 : index
    %c0_76 = arith.constant 0 : index
    %153 = vector.load %arg8[%c0_75, %c0_76] : memref<6x16xf32, #tpu.memory_space<vmem>>, vector<6x16xf32>
    %cst_77 = arith.constant dense<0.000000e+00> : vector<6x64xf32>
    %154 = tpu.matmul %153, %152, %cst_77 {dimension_numbers = #tpu.dot_dimension_numbers<[1], [0], [0], [1], [0, 0, 1, 1], [], []>} : vector<6x16xf32>, vector<16x64xf32>, vector<6x64xf32> -> vector<6x64xf32>
    %155 = vector.broadcast %4 : vector<1x64xf32> to vector<6x64xf32>
    %156 = arith.addf %154, %155 : vector<6x64xf32>
    %cst_78 = arith.constant dense<0.000000e+00> : vector<64xf32>
    %157 = vector.multi_reduction <add>, %156, %cst_78 [0] : vector<6x64xf32> to vector<64xf32>
    %158 = vector.shape_cast %157 : vector<64xf32> to vector<1x64xf32>
    %cst_79 = arith.constant 6.000000e+00 : f32
    %159 = vector.broadcast %cst_79 : f32 to vector<1x64xf32>
    %160 = arith.divf %158, %159 : vector<1x64xf32>
    %161 = vector.broadcast %160 : vector<1x64xf32> to vector<6x64xf32>
    %162 = arith.subf %156, %161 : vector<6x64xf32>
    %163 = arith.mulf %162, %162 : vector<6x64xf32>
    %cst_80 = arith.constant dense<0.000000e+00> : vector<64xf32>
    %164 = vector.multi_reduction <add>, %163, %cst_80 [0] : vector<6x64xf32> to vector<64xf32>
    %165 = vector.shape_cast %164 : vector<64xf32> to vector<1x64xf32>
    %cst_81 = arith.constant 6.000000e+00 : f32
    %166 = vector.broadcast %cst_81 : f32 to vector<1x64xf32>
    %167 = arith.divf %165, %166 : vector<1x64xf32>
    %cst_82 = arith.constant 9.99999974E-6 : f32
    %168 = vector.broadcast %cst_82 : f32 to vector<1x64xf32>
    %169 = arith.addf %167, %168 : vector<1x64xf32>
    %170 = math.rsqrt %169 : vector<1x64xf32>
    %171 = arith.mulf %170, %10 : vector<1x64xf32>
    %172 = vector.broadcast %171 : vector<1x64xf32> to vector<6x64xf32>
    %173 = arith.mulf %162, %172 : vector<6x64xf32>
    %174 = vector.broadcast %11 : vector<1x64xf32> to vector<6x64xf32>
    %175 = arith.addf %173, %174 : vector<6x64xf32>
    %cst_83 = arith.constant 2.000000e-01 : f32
    %176 = vector.broadcast %cst_83 : f32 to vector<6x64xf32>
    %177 = arith.mulf %176, %175 : vector<6x64xf32>
    %178 = arith.maximumf %175, %177 : vector<6x64xf32>
    %179 = vector.extract_strided_slice %178 {offsets = [0, 0], sizes = [4, 64], strides = [1, 1]} : vector<6x64xf32> to vector<4x64xf32>
    %c0_84 = arith.constant 0 : index
    %c0_85 = arith.constant 0 : index
    %180 = vector.load %arg5[%c0_84, %c0_85] : memref<192x128xf32, #tpu.memory_space<vmem>>, vector<64x128xf32>
    %cst_86 = arith.constant dense<0.000000e+00> : vector<4x128xf32>
    %181 = tpu.matmul %179, %180, %cst_86 {dimension_numbers = #tpu.dot_dimension_numbers<[1], [0], [0], [1], [0, 0, 1, 1], [], []>} : vector<4x64xf32>, vector<64x128xf32>, vector<4x128xf32> -> vector<4x128xf32>
    %182 = vector.extract_strided_slice %178 {offsets = [1, 0], sizes = [4, 64], strides = [1, 1]} : vector<6x64xf32> to vector<4x64xf32>
    %c64_87 = arith.constant 64 : index
    %c0_88 = arith.constant 0 : index
    %183 = vector.load %arg5[%c64_87, %c0_88] : memref<192x128xf32, #tpu.memory_space<vmem>>, vector<64x128xf32>
    %cst_89 = arith.constant dense<0.000000e+00> : vector<4x128xf32>
    %184 = tpu.matmul %182, %183, %cst_89 {dimension_numbers = #tpu.dot_dimension_numbers<[1], [0], [0], [1], [0, 0, 1, 1], [], []>} : vector<4x64xf32>, vector<64x128xf32>, vector<4x128xf32> -> vector<4x128xf32>
    %185 = arith.addf %181, %184 : vector<4x128xf32>
    %186 = vector.extract_strided_slice %178 {offsets = [2, 0], sizes = [4, 64], strides = [1, 1]} : vector<6x64xf32> to vector<4x64xf32>
    %c128_90 = arith.constant 128 : index
    %c0_91 = arith.constant 0 : index
    %187 = vector.load %arg5[%c128_90, %c0_91] : memref<192x128xf32, #tpu.memory_space<vmem>>, vector<64x128xf32>
    %cst_92 = arith.constant dense<0.000000e+00> : vector<4x128xf32>
    %188 = tpu.matmul %186, %187, %cst_92 {dimension_numbers = #tpu.dot_dimension_numbers<[1], [0], [0], [1], [0, 0, 1, 1], [], []>} : vector<4x64xf32>, vector<64x128xf32>, vector<4x128xf32> -> vector<4x128xf32>
    %189 = arith.addf %185, %188 : vector<4x128xf32>
    %c0_93 = arith.constant 0 : index
    %c0_94 = arith.constant 0 : index
    %190 = vector.load %arg9[%c0_93, %c0_94] : memref<2x4xf32, #tpu.memory_space<vmem>>, vector<2x4xf32>
    %cst_95 = arith.constant dense<0.000000e+00> : vector<2x128xf32>
    %191 = tpu.matmul %190, %189, %cst_95 {dimension_numbers = #tpu.dot_dimension_numbers<[1], [0], [0], [1], [0, 0, 1, 1], [], []>} : vector<2x4xf32>, vector<4x128xf32>, vector<2x128xf32> -> vector<2x128xf32>
    %192 = vector.broadcast %5 : vector<1x128xf32> to vector<2x128xf32>
    %193 = arith.addf %191, %192 : vector<2x128xf32>
    %194 = math.tanh %193 : vector<2x128xf32>
    %c0_96 = arith.constant 0 : index
    %c0_97 = arith.constant 0 : index
    %195 = vector.load %arg11[%c0_96, %c0_97] : memref<2x128xf32, #tpu.memory_space<vmem>>, vector<2x128xf32>
    tpu.vector_store %arg11[%c0_96, %c0_97], %194 {strides = array<i32>} : memref<2x128xf32, #tpu.memory_space<vmem>>, vector<2x128xf32>,
    return
  }
}

</mosaic_0001>

<bundles_post_ra>
// kernel: encoder_forward.1
= control target key start
LH: loop header
LB: loop body
LE: loop exit
PB: predicated region body
PF: predicated region fallthrough
CT: control target
= control target key end

     0   :  { %vm58_vm0 = vcmask 64512   ;;  %s3714_s0 = inlined_call_operand.vmem [shape: f32[118,8], index: 0, kind: input, shape index: {}]   ;;  %s3715_s1 = inlined_call_operand.vmem [shape: f32[8,8], index: 1, kind: input, shape index: {}]   ;;  %s3716_s2 = inlined_call_operand.vmem [shape: f32[56,16], index: 2, kind: input, shape index: {}]   ;;  %s3717_s3 = inlined_call_operand.vmem [shape: f32[112,32], index: 3, kind: input, shape index: {}]   ;;  %s3718_s4 = inlined_call_operand.vmem [shape: f32[224,64], index: 4, kind: input, shape index: {}]   ;;  %s3719_s5 = inlined_call_operand.vmem [shape: f32[192,128], index: 5, kind: input, shape index: {}]   ;;  %s3720_s6 = inlined_call_operand.vmem [shape: f32[54,112], index: 6, kind: input, shape index: {}]   ;;  %s3721_s7 = inlined_call_operand.vmem [shape: f32[22,48], index: 7, kind: input, shape index: {}]   ;;  %s3722_s8 = inlined_call_operand.vmem [shape: f32[6,16], index: 8, kind: input, shape index: {}]   ;;  %s3723_s9 = inlined_call_operand.vmem [shape: f32[2,4], index: 9, kind: input, shape index: {}]   ;;  %s3724_s10 = inlined_call_operand.vmem [shape: f32[16,128], index: 10, kind: input, shape index: {}]   ;;  %s3725_s11 = inlined_call_operand.hbm [shape: f32[2,128], index: 11, kind: output, shape index: {}]  }
   0x1   :  { %v56_v0 = vld [vmem:[%s3715_s1] sm:$0xff] }
   0x2   :  { %v41_v1 = vld [vmem:[%s3714_s0] sm:$0xff]  ;;  %119 = vmatpush.msra.mxu0 %v56_v0 }
   0x3   :  { %2284 = vmatmul.msk.f32.vlgmr.msra.gmra.mxu0 %vm58_vm0, %v41_v1 }
   0x4   :  { %16 = vsyncpa [#allocation3], 0  ;;  %v42_v2 = vld [vmem:[%s3714_s0 + $0x8] sm:$0xff]  ;;  %v43_v3 = vld [vmem:[%s3714_s0 + $0x10] sm:$0xff]  ;;  %vm213_vm1 = vcmask 1046528   ;;  %vm418_vm2 = vcmask 1045504  }
   0x5   :  { %v44_v4 = vld [vmem:[%s3714_s0 + $0x18] sm:$0xff]  ;;  %v45_v5 = vld [vmem:[%s3714_s0 + $0x20] sm:$0xff]  ;;  %v46_v6 = vld [vmem:[%s3714_s0 + $0x28] sm:$0xff]  ;;  %vm946_vm3 = vcmask 1041408   ;;  %vm682_vm4 = vcmask 1043456   ;;  %vm550_vm5 = vcmask 1044480  }
   0x6   :  { %v47_v7 = vld [vmem:[%s3714_s0 + $0x30] sm:$0xff]  ;;  %v48_v8 = vld [vmem:[%s3714_s0 + $0x38] sm:$0xff]  ;;  %v49_v9 = vld [vmem:[%s3714_s0 + $0x40] sm:$0xff]  ;;  %vm814_vm6 = vcmask 1042432   ;;  %vm1085_vm7 = vcmask 916480   ;;  %vm1145_vm8 = vcmask 130048  }
   0x7   :  { %v50_v10 = vld [vmem:[%s3714_s0 + $0x48] sm:$0xff]  ;;  %v51_v11 = vld [vmem:[%s3714_s0 + $0x50] sm:$0xff]  ;;  %v52_v12 = vld [vmem:[%s3714_s0 + $0x58] sm:$0xff]  ;;  %vm1157_vm9 = vcmask 128000   ;;  %vm1712_vm14 = vcmask 392192   ;;  %vm1748_vm15 = vcmask 261120  }
   0x8   :  { %v53_v13 = vld [vmem:[%s3714_s0 + $0x60] sm:$0xff]  ;;  %v54_v15 = vld [vmem:[%s3714_s0 + $0x68] sm:$0xff]  ;;  %v55_v16 = vld [vmem:[%s3714_s0 + $0x70] sm:$0x3f]  ;;  %s2518_s29 = smov [#allocation2]   ;;  %s2275_s13 = sshll.u32 %s3725_s11, 4  ;;  %s2276_s13 = int_to_ptr.hbm [resolvable:$true] %s2275_s13 }
   0x9   :  { %v196_v14 = vld [vmem:[%s3716_s2] sm:$0xff]  ;;  %v197_v17 = vld [vmem:[%s3716_s2 + $0x8] sm:$0xff]  ;;  %v417_v18 = vld [vmem:[%s3716_s2 + $0x10] sm:$0xff]  ;;  %s2273_s30 = sshll.u32 %s2518_s29, 4  ;;  %s2274_s30 = int_to_ptr.vmem [resolvable:$true] %s2273_s30 }
   0xa   :  { %373 = vmatpush.msra.mxu2 %v196_v14  ;;  %v945_v19 = vld [vmem:[%s3716_s2 + $0x30] sm:$0xff]  ;;  %286 = vmatpush.msra.mxu1 %v197_v17  ;;  %v39_v20 = vld [vmem:[%s3724_s10] sm:$0xff] }
   0xb   :  { %2285 = vmatmul.msk.f32.gmra.mxu0 %vm58_vm0, %v42_v2  ;;  %491 = vmatpush.msra.mxu3 %v417_v18  ;;  %v2657_v21 = vperm.slane %v39_v20, 0 }
   0xc   :  { %1019 = vmatpush.msrb.mxu0 %v945_v19 }
  0x13   :  { %2286 = vmatmul.msk.f32.gmra.mxu0 %vm58_vm0, %v43_v3 }
  0x1b   :  { %2287 = vmatmul.msk.f32.gmra.mxu0 %vm58_vm0, %v44_v4 }
  0x23   :  { %2288 = vmatmul.msk.f32.gmra.mxu0 %vm58_vm0, %v45_v5 }
  0x2b   :  { %2289 = vmatmul.msk.f32.gmra.mxu0 %vm58_vm0, %v46_v6 }
  0x33   :  { %2290 = vmatmul.msk.f32.gmra.mxu0 %vm58_vm0, %v47_v7 }
  0x3b   :  { %2291 = vmatmul.msk.f32.gmra.mxu0 %vm58_vm0, %v48_v8 }
  0x43   :  { %2292 = vmatmul.msk.f32.gmra.mxu0 %vm58_vm0, %v49_v9 }
  0x4b   :  { %2293 = vmatmul.msk.f32.gmra.mxu0 %vm58_vm0, %v50_v10 }
  0x53   :  { %2294 = vmatmul.msk.f32.gmra.mxu0 %vm58_vm0, %v51_v11 }
  0x5b   :  { %2295 = vmatmul.msk.f32.gmra.mxu0 %vm58_vm0, %v52_v12 }
  0x63   :  { %2296 = vmatmul.msk.f32.gmra.mxu0 %vm58_vm0, %v53_v13 }
  0x6b   :  { %2297 = vmatmul.msk.f32.gmra.mxu0 %vm58_vm0, %v54_v15 }
  0x73   :  { %2298 = vmatmul.msk.f32.gmra.mxu0 %vm58_vm0, %v55_v16 }
  0x80   :  { %v121_v22 = vpop.f32.mrf.mxu0 }
  0x81   :  { %v122_v23 = vadd.f32 %v121_v22, %v2657_v21 }
  0x83   :  { %v166_v24 = vmul.f32 0.2, %v122_v23 }
  0x85   :  { %v181_v25 = vmax.f32 %v122_v23, %v166_v24 }
  0x87   :  { %2313 = vmatmul.msk.f32.vlgmr.msra.gmra.mxu2 %vm58_vm0, %v181_v25  ;;  %v214_v30 = vrot.slane %v181_v25, 1  ;;  %v419_v31 = vrot.slane %v181_v25, 2  ;;  %v947_v32 = vrot.slane %v181_v25, 6  ;;  %v683_v33 = vrot.slane %v181_v25, 4 }
  0x88   :  { %v124_v26 = vpop.f32.mrf.mxu0  ;;  %v551_v39 = vrot.slane %v181_v25, 3  ;;  %v815_v41 = vrot.slane %v181_v25, 5 }
  0x89   :  { %v125_v27 = vadd.f32 %v124_v26, %v2657_v21 }
  0x8b   :  { %v167_v28 = vmul.f32 0.2, %v125_v27 }
  0x8d   :  { %v182_v29 = vmax.f32 %v125_v27, %v167_v28 }
  0x8f   :  { %2314 = vmatmul.msk.f32.gmra.mxu2 %vm58_vm0, %v182_v29  ;;  %v215_v34 = vrot.slane %v182_v29, 1  ;;  %v420_v35 = vrot.slane %v182_v29, 2  ;;  %v948_v36 = vrot.slane %v182_v29, 6  ;;  %v684_v37 = vrot.slane %v182_v29, 4 }
  0x90   :  { %v127_v38 = vpop.f32.mrf.mxu0  ;;  %v552_v40 = vrot.slane %v182_v29, 3  ;;  %v816_v42 = vrot.slane %v182_v29, 5 }
  0x91   :  { %v128_v43 = vadd.f32 %v127_v38, %v2657_v21  ;;  %v216_v44 = vsel %vm213_vm1, %v214_v30, %v215_v34  ;;  %v421_v45 = vsel %vm418_vm2, %v419_v31, %v420_v35  ;;  %v949_v46 = vsel %vm946_vm3, %v947_v32, %v948_v36 }
  0x92   :  { %2299 = vmatmul.msk.f32.vlgmr.msra.gmra.mxu1 %vm58_vm0, %v216_v44  ;;  %2327 = vmatmul.msk.f32.vlgmr.msra.gmra.mxu3 %vm58_vm0, %v421_v45  ;;  %v2670_v47 = vsel %vm682_vm4, %v683_v33, %v684_v37  ;;  %v2673_v48 = vsel %vm550_vm5, %v551_v39, %v552_v40  ;;  %v2676_v49 = vsel %vm814_vm6, %v815_v41, %v816_v42 }
  0x93   :  { %v168_v50 = vmul.f32 0.2, %v128_v43  ;;  %2383 = vmatmul.msk.f32.vlgmr.msrb.gmra.mxu0 %vm58_vm0, %v949_v46 }
  0x95   :  { %v183_v51 = vmax.f32 %v128_v43, %v168_v50 }
  0x97   :  { %2315 = vmatmul.msk.f32.gmra.mxu2 %vm58_vm0, %v183_v51  ;;  %v217_v52 = vrot.slane %v183_v51, 1  ;;  %v422_v53 = vrot.slane %v183_v51, 2  ;;  %v950_v54 = vrot.slane %v183_v51, 6  ;;  %v686_v55 = vrot.slane %v183_v51, 4 }
  0x98   :  { %v130_v56 = vpop.f32.mrf.mxu0  ;;  %v554_v57 = vrot.slane %v183_v51, 3  ;;  %v818_v58 = vrot.slane %v183_v51, 5 }
  0x99   :  { %v131_v59 = vadd.f32 %v130_v56, %v2657_v21  ;;  %v218_v60 = vsel %vm213_vm1, %v215_v34, %v217_v52  ;;  %v423_v61 = vsel %vm418_vm2, %v420_v35, %v422_v53  ;;  %v951_v62 = vsel %vm946_vm3, %v948_v36, %v950_v54 }
  0x9a   :  { %2300 = vmatmul.msk.f32.gmra.mxu1 %vm58_vm0, %v218_v60  ;;  %2328 = vmatmul.msk.f32.gmra.mxu3 %vm58_vm0, %v423_v61  ;;  %v2687_v63 = vsel %vm682_vm4, %v684_v37, %v686_v55  ;;  %v2690_v0 = vsel %vm550_vm5, %v552_v40, %v554_v57  ;;  %v2693_v1 = vsel %vm814_vm6, %v816_v42, %v818_v58 }
  0x9b   :  { %v169_v2 = vmul.f32 0.2, %v131_v59  ;;  %2384 = vmatmul.msk.f32.gmra.mxu0 %vm58_vm0, %v951_v62 }
  0x9d   :  { %v184_v3 = vmax.f32 %v131_v59, %v169_v2 }
  0x9f   :  { %2316 = vmatmul.msk.f32.gmra.mxu2 %vm58_vm0, %v184_v3  ;;  %v219_v4 = vrot.slane %v184_v3, 1  ;;  %v424_v5 = vrot.slane %v184_v3, 2  ;;  %v952_v6 = vrot.slane %v184_v3, 6  ;;  %v688_v7 = vrot.slane %v184_v3, 4 }
  0xa0   :  { %v133_v8 = vpop.f32.mrf.mxu0  ;;  %v556_v9 = vrot.slane %v184_v3, 3  ;;  %v820_v10 = vrot.slane %v184_v3, 5 }
  0xa1   :  { %v134_v11 = vadd.f32 %v133_v8, %v2657_v21  ;;  %v220_v12 = vsel %vm213_vm1, %v217_v52, %v219_v4  ;;  %v425_v13 = vsel %vm418_vm2, %v422_v53, %v424_v5  ;;  %v953_v14 = vsel %vm946_vm3, %v950_v54, %v952_v6 }
  0xa2   :  { %2301 = vmatmul.msk.f32.gmra.mxu1 %vm58_vm0, %v220_v12  ;;  %2329 = vmatmul.msk.f32.gmra.mxu3 %vm58_vm0, %v425_v13  ;;  %v2704_v15 = vsel %vm682_vm4, %v686_v55, %v688_v7  ;;  %v2707_v16 = vsel %vm550_vm5, %v554_v57, %v556_v9  ;;  %v2710_v17 = vsel %vm814_vm6, %v818_v58, %v820_v10 }
  0xa3   :  { %v170_v18 = vmul.f32 0.2, %v134_v11  ;;  %2385 = vmatmul.msk.f32.gmra.mxu0 %vm58_vm0, %v953_v14 }
  0xa5   :  { %v185_v19 = vmax.f32 %v134_v11, %v170_v18 }
  0xa7   :  { %2317 = vmatmul.msk.f32.gmra.mxu2 %vm58_vm0, %v185_v19  ;;  %v221_v20 = vrot.slane %v185_v19, 1  ;;  %v426_v22 = vrot.slane %v185_v19, 2  ;;  %v954_v23 = vrot.slane %v185_v19, 6  ;;  %v690_v24 = vrot.slane %v185_v19, 4 }
  0xa8   :  { %v136_v25 = vpop.f32.mrf.mxu0  ;;  %v558_v26 = vrot.slane %v185_v19, 3  ;;  %v822_v27 = vrot.slane %v185_v19, 5 }
  0xa9   :  { %v137_v28 = vadd.f32 %v136_v25, %v2657_v21  ;;  %v222_v29 = vsel %vm213_vm1, %v219_v4, %v221_v20  ;;  %v427_v30 = vsel %vm418_vm2, %v424_v5, %v426_v22  ;;  %v955_v31 = vsel %vm946_vm3, %v952_v6, %v954_v23 }
  0xaa   :  { %2302 = vmatmul.msk.f32.gmra.mxu1 %vm58_vm0, %v222_v29  ;;  %2330 = vmatmul.msk.f32.gmra.mxu3 %vm58_vm0, %v427_v30  ;;  %v2721_v32 = vsel %vm682_vm4, %v688_v7, %v690_v24  ;;  %v2724_v33 = vsel %vm550_vm5, %v556_v9, %v558_v26  ;;  %v2727_v34 = vsel %vm814_vm6, %v820_v10, %v822_v27 }
  0xab   :  { %v171_v35 = vmul.f32 0.2, %v137_v28  ;;  %2386 = vmatmul.msk.f32.gmra.mxu0 %vm58_vm0, %v955_v31  ;;  %v681_v31 = vld [vmem:[%s3716_s2 + $0x20] sm:$0xff] }
  0xac   :  { %755 = vmatpush.msrb.mxu2 %v681_v31 }
  0xad   :  { %v186_v36 = vmax.f32 %v137_v28, %v171_v35 }
  0xaf   :  { %2318 = vmatmul.msk.f32.gmra.mxu2 %vm58_vm0, %v186_v36  ;;  %v223_v37 = vrot.slane %v186_v36, 1  ;;  %v428_v38 = vrot.slane %v186_v36, 2  ;;  %v956_v39 = vrot.slane %v186_v36, 6  ;;  %v692_v40 = vrot.slane %v186_v36, 4 }
  0xb0   :  { %v139_v41 = vpop.f32.mrf.mxu0  ;;  %v560_v42 = vrot.slane %v186_v36, 3  ;;  %v824_v43 = vrot.slane %v186_v36, 5 }
  0xb1   :  { %v140_v44 = vadd.f32 %v139_v41, %v2657_v21  ;;  %v224_v45 = vsel %vm213_vm1, %v221_v20, %v223_v37  ;;  %v429_v46 = vsel %vm418_vm2, %v426_v22, %v428_v38  ;;  %v957_v50 = vsel %vm946_vm3, %v954_v23, %v956_v39 }
  0xb2   :  { %2303 = vmatmul.msk.f32.gmra.mxu1 %vm58_vm0, %v224_v45  ;;  %2331 = vmatmul.msk.f32.gmra.mxu3 %vm58_vm0, %v429_v46  ;;  %v2738_v51 = vsel %vm682_vm4, %v690_v24, %v692_v40  ;;  %v2741_v52 = vsel %vm550_vm5, %v558_v26, %v560_v42  ;;  %v2744_v53 = vsel %vm814_vm6, %v822_v27, %v824_v43 }
  0xb3   :  { %v172_v54 = vmul.f32 0.2, %v140_v44  ;;  %2387 = vmatmul.msk.f32.gmra.mxu0 %vm58_vm0, %v957_v50 }
  0xb5   :  { %v187_v55 = vmax.f32 %v140_v44, %v172_v54 }
  0xb7   :  { %2319 = vmatmul.msk.f32.gmra.mxu2 %vm58_vm0, %v187_v55  ;;  %v225_v56 = vrot.slane %v187_v55, 1  ;;  %v430_v57 = vrot.slane %v187_v55, 2  ;;  %v958_v58 = vrot.slane %v187_v55, 6  ;;  %v694_v59 = vrot.slane %v187_v55, 4 }
  0xb8   :  { %v142_v60 = vpop.f32.mrf.mxu0  ;;  %v562_v61 = vrot.slane %v187_v55, 3  ;;  %v826_v62 = vrot.slane %v187_v55, 5 }
  0xb9   :  { %v143_v2 = vadd.f32 %v142_v60, %v2657_v21  ;;  %v226_v3 = vsel %vm213_vm1, %v223_v37, %v225_v56  ;;  %v431_v4 = vsel %vm418_vm2, %v428_v38, %v430_v57  ;;  %v959_v5 = vsel %vm946_vm3, %v956_v39, %v958_v58  ;;  %v813_v38 = vld [vmem:[%s3716_s2 + $0x28] sm:$0xff] }
  0xba   :  { %2304 = vmatmul.msk.f32.gmra.mxu1 %vm58_vm0, %v226_v3  ;;  %2332 = vmatmul.msk.f32.gmra.mxu3 %vm58_vm0, %v431_v4  ;;  %v2755_v6 = vsel %vm682_vm4, %v692_v40, %v694_v59  ;;  %v2758_v7 = vsel %vm550_vm5, %v560_v42, %v562_v61  ;;  %v2761_v8 = vsel %vm814_vm6, %v824_v43, %v826_v62 }
  0xbb   :  { %v173_v9 = vmul.f32 0.2, %v143_v2  ;;  %2388 = vmatmul.msk.f32.gmra.mxu0 %vm58_vm0, %v959_v5  ;;  %887 = vmatpush.msrb.mxu3 %v813_v38 }
  0xbd   :  { %v188_v10 = vmax.f32 %v143_v2, %v173_v9 }
  0xbf   :  { %2320 = vmatmul.msk.f32.gmra.mxu2 %vm58_vm0, %v188_v10  ;;  %v227_v11 = vrot.slane %v188_v10, 1  ;;  %v432_v12 = vrot.slane %v188_v10, 2  ;;  %v960_v13 = vrot.slane %v188_v10, 6  ;;  %v696_v14 = vrot.slane %v188_v10, 4 }
  0xc0   :  { %v145_v18 = vpop.f32.mrf.mxu0  ;;  %v564_v19 = vrot.slane %v188_v10, 3  ;;  %v828_v20 = vrot.slane %v188_v10, 5 }
  0xc1   :  { %v146_v22 = vadd.f32 %v145_v18, %v2657_v21  ;;  %v228_v23 = vsel %vm213_vm1, %v225_v56, %v227_v11  ;;  %v433_v24 = vsel %vm418_vm2, %v430_v57, %v432_v12  ;;  %v961_v25 = vsel %vm946_vm3, %v958_v58, %v960_v13  ;;  %v549_v58 = vld [vmem:[%s3716_s2 + $0x18] sm:$0xff] }
  0xc2   :  { %2305 = vmatmul.msk.f32.gmra.mxu1 %vm58_vm0, %v228_v23  ;;  %2333 = vmatmul.msk.f32.gmra.mxu3 %vm58_vm0, %v433_v24  ;;  %v2772_v26 = vsel %vm682_vm4, %v694_v59, %v696_v14  ;;  %v2775_v27 = vsel %vm550_vm5, %v562_v61, %v564_v19  ;;  %v2778_v28 = vsel %vm814_vm6, %v826_v62, %v828_v20 }
  0xc3   :  { %v174_v29 = vmul.f32 0.2, %v146_v22  ;;  %2389 = vmatmul.msk.f32.gmra.mxu0 %vm58_vm0, %v961_v25  ;;  %623 = vmatpush.msrb.mxu1 %v549_v58 }
  0xc5   :  { %v189_v30 = vmax.f32 %v146_v22, %v174_v29 }
  0xc7   :  { %2321 = vmatmul.msk.f32.gmra.mxu2 %vm58_vm0, %v189_v30  ;;  %v229_v35 = vrot.slane %v189_v30, 1  ;;  %v434_v36 = vrot.slane %v189_v30, 2  ;;  %v962_v37 = vrot.slane %v189_v30, 6  ;;  %v698_v39 = vrot.slane %v189_v30, 4 }
  0xc8   :  { %v148_v40 = vpop.f32.mrf.mxu0  ;;  %v566_v41 = vrot.slane %v189_v30, 3  ;;  %v830_v42 = vrot.slane %v189_v30, 5 }
  0xc9   :  { %v149_v43 = vadd.f32 %v148_v40, %v2657_v21  ;;  %v230_v44 = vsel %vm213_vm1, %v227_v11, %v229_v35  ;;  %v435_v45 = vsel %vm418_vm2, %v432_v12, %v434_v36  ;;  %v963_v46 = vsel %vm946_vm3, %v960_v13, %v962_v37 }
  0xca   :  { %2306 = vmatmul.msk.f32.gmra.mxu1 %vm58_vm0, %v230_v44  ;;  %2334 = vmatmul.msk.f32.gmra.mxu3 %vm58_vm0, %v435_v45  ;;  %v2795_v50 = vsel %vm682_vm4, %v696_v14, %v698_v39  ;;  %v2798_v54 = vsel %vm550_vm5, %v564_v19, %v566_v41  ;;  %v2801_v55 = vsel %vm814_vm6, %v828_v20, %v830_v42 }
  0xcb   :  { %v175_v56 = vmul.f32 0.2, %v149_v43  ;;  %2390 = vmatmul.msk.f32.gmra.mxu0 %vm58_vm0, %v963_v46 }
  0xcd   :  { %v190_v57 = vmax.f32 %v149_v43, %v175_v56 }
  0xcf   :  { %2322 = vmatmul.msk.f32.gmra.mxu2 %vm58_vm0, %v190_v57  ;;  %v231_v59 = vrot.slane %v190_v57, 1  ;;  %v436_v60 = vrot.slane %v190_v57, 2  ;;  %v964_v61 = vrot.slane %v190_v57, 6  ;;  %v700_v62 = vrot.slane %v190_v57, 4 }
  0xd0   :  { %v151_v2 = vpop.f32.mrf.mxu0  ;;  %v568_v3 = vrot.slane %v190_v57, 3  ;;  %v832_v4 = vrot.slane %v190_v57, 5 }
  0xd1   :  { %v152_v5 = vadd.f32 %v151_v2, %v2657_v21  ;;  %v232_v9 = vsel %vm213_vm1, %v229_v35, %v231_v59  ;;  %v437_v10 = vsel %vm418_vm2, %v434_v36, %v436_v60  ;;  %v965_v11 = vsel %vm946_vm3, %v962_v37, %v964_v61 }
  0xd2   :  { %2307 = vmatmul.msk.f32.gmra.mxu1 %vm58_vm0, %v232_v9  ;;  %2335 = vmatmul.msk.f32.gmra.mxu3 %vm58_vm0, %v437_v10  ;;  %v2815_v12 = vsel %vm682_vm4, %v698_v39, %v700_v62  ;;  %v2818_v13 = vsel %vm550_vm5, %v566_v41, %v568_v3  ;;  %v2821_v14 = vsel %vm814_vm6, %v830_v42, %v832_v4 }
  0xd3   :  { %v176_v18 = vmul.f32 0.2, %v152_v5  ;;  %2391 = vmatmul.msk.f32.gmra.mxu0 %vm58_vm0, %v965_v11 }
  0xd5   :  { %v191_v19 = vmax.f32 %v152_v5, %v176_v18 }
  0xd7   :  { %2323 = vmatmul.msk.f32.gmra.mxu2 %vm58_vm0, %v191_v19  ;;  %v233_v20 = vrot.slane %v191_v19, 1  ;;  %v438_v22 = vrot.slane %v191_v19, 2  ;;  %v966_v23 = vrot.slane %v191_v19, 6  ;;  %v702_v24 = vrot.slane %v191_v19, 4 }
  0xd8   :  { %v154_v25 = vpop.f32.mrf.mxu0  ;;  %v570_v29 = vrot.slane %v191_v19, 3  ;;  %v834_v30 = vrot.slane %v191_v19, 5 }
  0xd9   :  { %v155_v31 = vadd.f32 %v154_v25, %v2657_v21  ;;  %v234_v35 = vsel %vm213_vm1, %v231_v59, %v233_v20  ;;  %v439_v36 = vsel %vm418_vm2, %v436_v60, %v438_v22  ;;  %v967_v37 = vsel %vm946_vm3, %v964_v61, %v966_v23 }
  0xda   :  { %2308 = vmatmul.msk.f32.gmra.mxu1 %vm58_vm0, %v234_v35  ;;  %2336 = vmatmul.msk.f32.gmra.mxu3 %vm58_vm0, %v439_v36  ;;  %v2832_v38 = vsel %vm682_vm4, %v700_v62, %v702_v24  ;;  %v2835_v39 = vsel %vm550_vm5, %v568_v3, %v570_v29  ;;  %v2838_v40 = vsel %vm814_vm6, %v832_v4, %v834_v30 }
  0xdb   :  { %v177_v41 = vmul.f32 0.2, %v155_v31  ;;  %2392 = vmatmul.msk.f32.gmra.mxu0 %vm58_vm0, %v967_v37 }
  0xdd   :  { %v192_v42 = vmax.f32 %v155_v31, %v177_v41 }
  0xdf   :  { %2324 = vmatmul.msk.f32.gmra.mxu2 %vm58_vm0, %v192_v42  ;;  %v235_v43 = vrot.slane %v192_v42, 1  ;;  %v440_v44 = vrot.slane %v192_v42, 2  ;;  %v968_v45 = vrot.slane %v192_v42, 6  ;;  %v704_v46 = vrot.slane %v192_v42, 4 }
  0xe0   :  { %v157_v56 = vpop.f32.mrf.mxu0  ;;  %v572_v57 = vrot.slane %v192_v42, 3  ;;  %v836_v58 = vrot.slane %v192_v42, 5 }
  0xe1   :  { %v158_v59 = vadd.f32 %v157_v56, %v2657_v21  ;;  %v236_v60 = vsel %vm213_vm1, %v233_v20, %v235_v43  ;;  %v441_v61 = vsel %vm418_vm2, %v438_v22, %v440_v44  ;;  %v969_v62 = vsel %vm946_vm3, %v966_v23, %v968_v45 }
  0xe2   :  { %2309 = vmatmul.msk.f32.gmra.mxu1 %vm58_vm0, %v236_v60  ;;  %2337 = vmatmul.msk.f32.gmra.mxu3 %vm58_vm0, %v441_v61  ;;  %v2849_v2 = vsel %vm682_vm4, %v702_v24, %v704_v46  ;;  %v2852_v3 = vsel %vm550_vm5, %v570_v29, %v572_v57  ;;  %v2855_v4 = vsel %vm814_vm6, %v834_v30, %v836_v58 }
  0xe3   :  { %v178_v5 = vmul.f32 0.2, %v158_v59  ;;  %2393 = vmatmul.msk.f32.gmra.mxu0 %vm58_vm0, %v969_v62 }
  0xe5   :  { %v193_v9 = vmax.f32 %v158_v59, %v178_v5 }
  0xe7   :  { %2325 = vmatmul.msk.f32.gmra.mxu2 %vm58_vm0, %v193_v9  ;;  %v237_v10 = vrot.slane %v193_v9, 1  ;;  %v442_v11 = vrot.slane %v193_v9, 2  ;;  %v970_v18 = vrot.slane %v193_v9, 6  ;;  %v706_v19 = vrot.slane %v193_v9, 4 }
  0xe8   :  { %v160_v20 = vpop.f32.mrf.mxu0  ;;  %v574_v22 = vrot.slane %v193_v9, 3  ;;  %v838_v23 = vrot.slane %v193_v9, 5 }
  0xe9   :  { %v161_v24 = vadd.f32 %v160_v20, %v2657_v21  ;;  %v238_v25 = vsel %vm213_vm1, %v235_v43, %v237_v10  ;;  %v443_v29 = vsel %vm418_vm2, %v440_v44, %v442_v11  ;;  %v971_v30 = vsel %vm946_vm3, %v968_v45, %v970_v18 }
  0xea   :  { %2310 = vmatmul.msk.f32.gmra.mxu1 %vm58_vm0, %v238_v25  ;;  %2338 = vmatmul.msk.f32.gmra.mxu3 %vm58_vm0, %v443_v29  ;;  %v2866_v31 = vsel %vm682_vm4, %v704_v46, %v706_v19  ;;  %v2869_v35 = vsel %vm550_vm5, %v572_v57, %v574_v22  ;;  %v2872_v36 = vsel %vm814_vm6, %v836_v58, %v838_v23 }
  0xeb   :  { %v179_v37 = vmul.f32 0.2, %v161_v24  ;;  %2394 = vmatmul.msk.f32.gmra.mxu0 %vm58_vm0, %v971_v30 }
  0xed   :  { %v194_v41 = vmax.f32 %v161_v24, %v179_v37 }
  0xef   :  { %2326 = vmatmul.msk.f32.gmra.mxu2 %vm58_vm0, %v194_v41  ;;  %v239_v42 = vrot.slane %v194_v41, 1  ;;  %v444_v43 = vrot.slane %v194_v41, 2  ;;  %v972_v44 = vrot.slane %v194_v41, 6  ;;  %v708_v45 = vrot.slane %v194_v41, 4 }
  0xf0   :  { %v163_v56 = vpop.f32.mrf.mxu0  ;;  %v576_v59 = vrot.slane %v194_v41, 3  ;;  %v840_v46 = vrot.slane %v194_v41, 5 }
  0xf1   :  { %v164_v60 = vadd.f32 %v163_v56, %v2657_v21  ;;  %v240_v57 = vsel %vm213_vm1, %v237_v10, %v239_v42  ;;  %v445_v58 = vsel %vm418_vm2, %v442_v11, %v444_v43  ;;  %v973_v61 = vsel %vm946_vm3, %v970_v18, %v972_v44 }
  0xf2   :  { %2311 = vmatmul.msk.f32.gmra.mxu1 %vm58_vm0, %v240_v57  ;;  %2339 = vmatmul.msk.f32.gmra.mxu3 %vm58_vm0, %v445_v58  ;;  %v2883_v62 = vsel %vm682_vm4, %v706_v19, %v708_v45  ;;  %v2886_v5 = vsel %vm550_vm5, %v574_v22, %v576_v59  ;;  %v2889_v9 = vsel %vm814_vm6, %v838_v23, %v840_v46 }
  0xf3   :  { %v180_v21 = vmul.f32 0.2, %v164_v60  ;;  %2395 = vmatmul.msk.f32.gmra.mxu0 %vm58_vm0, %v973_v61 }
  0xf5   :  { %v195_v10 = vmax.f32 %v164_v60, %v180_v21 }
  0xf7   :  { %2355 = vmatmul.msk.f32.vlgmr.msrb.gmra.mxu2 %vm58_vm0, %v2670_v47  ;;  %v241_v11 = vrot.slane %v195_v10, 1  ;;  %v446_v18 = vrot.slane %v195_v10, 2  ;;  %v974_v20 = vrot.slane %v195_v10, 6  ;;  %v710_v24 = vrot.slane %v195_v10, 4 }
  0xf8   :  { %v578_v25 = vrot.slane %v195_v10, 3  ;;  %v842_v19 = vrot.slane %v195_v10, 5 }
  0xf9   :  { %v242_v29 = vsel %vm213_vm1, %v239_v42, %v241_v11  ;;  %v447_v22 = vsel %vm418_vm2, %v444_v43, %v446_v18  ;;  %v975_v23 = vsel %vm946_vm3, %v972_v44, %v974_v20  ;;  %v2898_v30 = vsel %vm682_vm4, %v708_v45, %v710_v24 }
  0xfa   :  { %2312 = vmatmul.msk.f32.gmra.mxu1 %vm58_vm0, %v242_v29  ;;  %2340 = vmatmul.msk.f32.gmra.mxu3 %vm58_vm0, %v447_v22  ;;  %v2903_v47 = vsel %vm550_vm5, %v576_v59, %v578_v25  ;;  %v2906_v37 = vsel %vm814_vm6, %v840_v46, %v842_v19 }
  0xfb   :  { %2396 = vmatmul.msk.f32.gmra.mxu0 %vm58_vm0, %v975_v23 }
  0xff   :  { %2356 = vmatmul.msk.f32.gmra.mxu2 %vm58_vm0, %v2687_v63 }
 0x102   :  { %2341 = vmatmul.msk.f32.vlgmr.msrb.gmra.mxu1 %vm58_vm0, %v2673_v48  ;;  %2369 = vmatmul.msk.f32.vlgmr.msrb.gmra.mxu3 %vm58_vm0, %v2676_v49 }
 0x107   :  { %2357 = vmatmul.msk.f32.gmra.mxu2 %vm58_vm0, %v2704_v15 }
 0x10a   :  { %v375_v41 = vpop.f32.mrf.mxu2  ;;  %2342 = vmatmul.msk.f32.gmra.mxu1 %vm58_vm0, %v2690_v0  ;;  %2370 = vmatmul.msk.f32.gmra.mxu3 %vm58_vm0, %v2693_v1 }
 0x10f   :  { %v288_v42 = vpop.f32.mrf.mxu1  ;;  %2358 = vmatmul.msk.f32.gmra.mxu2 %vm58_vm0, %v2721_v32 }
 0x110   :  { %v376_v48 = vadd.f32 %v375_v41, %v288_v42  ;;  %v3045_v57 = vpop.f32.mrf.mxu0 }
 0x111   :  { %3730 = vst [vmem:[#allocation9_spill] sm:$0xff] %v3045_v57 }
 0x112   :  { %v378_v63 = vpop.f32.mrf.mxu2  ;;  %2343 = vmatmul.msk.f32.gmra.mxu1 %vm58_vm0, %v2707_v16  ;;  %2371 = vmatmul.msk.f32.gmra.mxu3 %vm58_vm0, %v2710_v17 }
 0x115   :  { %v493_v49 = vpop.f32.mrf.mxu3 }
 0x116   :  { %v2927_v15 = vadd.f32 %v493_v49, %v376_v48 }
 0x117   :  { %v291_v43 = vpop.f32.mrf.mxu1  ;;  %2359 = vmatmul.msk.f32.gmra.mxu2 %vm58_vm0, %v2738_v51 }
 0x118   :  { %3726 = vst [vmem:[#allocation5_spill] sm:$0xff] %v2927_v15  ;;  %v379_v1 = vadd.f32 %v378_v63, %v291_v43  ;;  %v3049_v21 = vpop.f32.mrf.mxu0 }
 0x119   :  { %3731 = vst [vmem:[#allocation10_spill] sm:$0xff] %v3049_v21 }
 0x11a   :  { %v381_v0 = vpop.f32.mrf.mxu2  ;;  %2344 = vmatmul.msk.f32.gmra.mxu1 %vm58_vm0, %v2724_v33  ;;  %2372 = vmatmul.msk.f32.gmra.mxu3 %vm58_vm0, %v2727_v34 }
 0x11d   :  { %v496_v16 = vpop.f32.mrf.mxu3 }
 0x11e   :  { %v2935_v32 = vadd.f32 %v496_v16, %v379_v1 }
 0x11f   :  { %v294_v17 = vpop.f32.mrf.mxu1  ;;  %2360 = vmatmul.msk.f32.gmra.mxu2 %vm58_vm0, %v2755_v6 }
 0x120   :  { %3727 = vst [vmem:[#allocation6_spill] sm:$0xff] %v2935_v32  ;;  %v382_v51 = vadd.f32 %v381_v0, %v294_v17  ;;  %v3055_v20 = vpop.f32.mrf.mxu0 }
 0x121   :  { %3734 = vst [vmem:[#allocation13_spill] sm:$0xff] %v3055_v20 }
 0x122   :  { %v384_v44 = vpop.f32.mrf.mxu2  ;;  %2345 = vmatmul.msk.f32.gmra.mxu1 %vm58_vm0, %v2741_v52  ;;  %2373 = vmatmul.msk.f32.gmra.mxu3 %vm58_vm0, %v2744_v53 }
 0x125   :  { %v499_v33 = vpop.f32.mrf.mxu3 }
 0x126   :  { %v2943_v45 = vadd.f32 %v499_v33, %v382_v51 }
 0x127   :  { %v297_v34 = vpop.f32.mrf.mxu1  ;;  %2361 = vmatmul.msk.f32.gmra.mxu2 %vm58_vm0, %v2772_v26 }
 0x128   :  { %3728 = vst [vmem:[#allocation7_spill] sm:$0xff] %v2943_v45  ;;  %v385_v52 = vadd.f32 %v384_v44, %v297_v34  ;;  %v3065_v22 = vpop.f32.mrf.mxu0 }
 0x129   :  { %3739 = vst [vmem:[#allocation18_spill] sm:$0xff] %v3065_v22 }
 0x12a   :  { %v2947_v56 = vpop.f32.mrf.mxu2  ;;  %2346 = vmatmul.msk.f32.gmra.mxu1 %vm58_vm0, %v2758_v7  ;;  %2374 = vmatmul.msk.f32.gmra.mxu3 %vm58_vm0, %v2761_v8 }
 0x12d   :  { %v502_v6 = vpop.f32.mrf.mxu3 }
 0x12e   :  { %v2953_v59 = vadd.f32 %v502_v6, %v385_v52 }
 0x12f   :  { %v2955_v53 = vpop.f32.mrf.mxu1  ;;  %2362 = vmatmul.msk.f32.gmra.mxu2 %vm58_vm0, %v2795_v50 }
 0x130   :  { %3729 = vst [vmem:[#allocation8_spill] sm:$0xff] %v2953_v59 }
 0x132   :  { %v2959_v46 = vpop.f32.mrf.mxu2  ;;  %2347 = vmatmul.msk.f32.gmra.mxu1 %vm58_vm0, %v2775_v27  ;;  %2375 = vmatmul.msk.f32.gmra.mxu3 %vm58_vm0, %v2778_v28 }
 0x135   :  { %v2965_v7 = vpop.f32.mrf.mxu3 }
 0x137   :  { %v2967_v8 = vpop.f32.mrf.mxu1  ;;  %2363 = vmatmul.msk.f32.gmra.mxu2 %vm58_vm0, %v2815_v12 }
 0x13a   :  { %v2971_v26 = vpop.f32.mrf.mxu2  ;;  %2348 = vmatmul.msk.f32.gmra.mxu1 %vm58_vm0, %v2798_v54  ;;  %2376 = vmatmul.msk.f32.gmra.mxu3 %vm58_vm0, %v2801_v55 }
 0x13d   :  { %v2977_v50 = vpop.f32.mrf.mxu3 }
 0x13f   :  { %v2979_v27 = vpop.f32.mrf.mxu1  ;;  %2364 = vmatmul.msk.f32.gmra.mxu2 %vm58_vm0, %v2832_v38 }
 0x142   :  { %v2983_v28 = vpop.f32.mrf.mxu2  ;;  %2349 = vmatmul.msk.f32.gmra.mxu1 %vm58_vm0, %v2818_v13  ;;  %2377 = vmatmul.msk.f32.gmra.mxu3 %vm58_vm0, %v2821_v14 }
 0x145   :  { %v2989_v12 = vpop.f32.mrf.mxu3 }
 0x147   :  { %v2991_v54 = vpop.f32.mrf.mxu1  ;;  %2365 = vmatmul.msk.f32.gmra.mxu2 %vm58_vm0, %v2849_v2 }
 0x14a   :  { %v2995_v55 = vpop.f32.mrf.mxu2  ;;  %2350 = vmatmul.msk.f32.gmra.mxu1 %vm58_vm0, %v2835_v39  ;;  %2378 = vmatmul.msk.f32.gmra.mxu3 %vm58_vm0, %v2838_v40 }
 0x14d   :  { %v3001_v38 = vpop.f32.mrf.mxu3 }
 0x14f   :  { %v3003_v13 = vpop.f32.mrf.mxu1  ;;  %2366 = vmatmul.msk.f32.gmra.mxu2 %vm58_vm0, %v2866_v31 }
 0x152   :  { %v3007_v14 = vpop.f32.mrf.mxu2  ;;  %2351 = vmatmul.msk.f32.gmra.mxu1 %vm58_vm0, %v2852_v3  ;;  %2379 = vmatmul.msk.f32.gmra.mxu3 %vm58_vm0, %v2855_v4 }
 0x155   :  { %v3013_v2 = vpop.f32.mrf.mxu3 }
 0x157   :  { %v3015_v39 = vpop.f32.mrf.mxu1  ;;  %2367 = vmatmul.msk.f32.gmra.mxu2 %vm58_vm0, %v2883_v62 }
 0x15a   :  { %v3019_v40 = vpop.f32.mrf.mxu2  ;;  %2352 = vmatmul.msk.f32.gmra.mxu1 %vm58_vm0, %v2869_v35  ;;  %2380 = vmatmul.msk.f32.gmra.mxu3 %vm58_vm0, %v2872_v36 }
 0x15d   :  { %v3025_v31 = vpop.f32.mrf.mxu3 }
 0x15f   :  { %v3027_v3 = vpop.f32.mrf.mxu1  ;;  %2368 = vmatmul.msk.f32.gmra.mxu2 %vm58_vm0, %v2898_v30 }
 0x162   :  { %v3031_v4 = vpop.f32.mrf.mxu2  ;;  %2353 = vmatmul.msk.f32.gmra.mxu1 %vm58_vm0, %v2886_v5  ;;  %2381 = vmatmul.msk.f32.gmra.mxu3 %vm58_vm0, %v2889_v9 }
 0x165   :  { %v3037_v60 = vpop.f32.mrf.mxu3 }
 0x167   :  { %v3039_v35 = vpop.f32.mrf.mxu1 }
 0x168   :  { %v409_v45 = vadd.f32 %v3031_v4, %v3039_v35 }
 0x16a   :  { %v411_v36 = vpop.f32.mrf.mxu2  ;;  %2354 = vmatmul.msk.f32.gmra.mxu1 %vm58_vm0, %v2903_v47  ;;  %2382 = vmatmul.msk.f32.gmra.mxu3 %vm58_vm0, %v2906_v37  ;;  %v3073_v37 = vpop.f32.mrf.mxu0  ;;  %vm1752_vm0 = vcmask 259072  }
 0x16b   :  { %3743 = vst [vmem:[#allocation22_spill] sm:$0xff] %v3073_v37 }
 0x16d   :  { %v3047_v58 = vpop.f32.mrf.mxu3 }
 0x16e   :  { %v546_v59 = vadd.f32 %v3047_v58, %v409_v45  ;;  %v397_v45 = vadd.f32 %v2983_v28, %v2991_v54  ;;  %v391_v28 = vadd.f32 %v2959_v46, %v2967_v8 }
 0x16f   :  { %v324_v61 = vpop.f32.mrf.mxu1 }
 0x172   :  { %v414_v62 = vpop.f32.mrf.mxu2  ;;  %v3083_v49 = vpop.f32.mrf.mxu0 }
 0x173   :  { %3748 = vst [vmem:[#allocation27_spill] sm:$0xff] %v3083_v49 }
 0x175   :  { %v529_v5 = vpop.f32.mrf.mxu3 }
 0x177   :  { %v327_v9 = vpop.f32.mrf.mxu1 }
 0x17a   :  { %v3051_v10 = vpop.f32.mrf.mxu2  ;;  %v3093_v17 = vpop.f32.mrf.mxu0 }
 0x17b   :  { %3732 = vst [vmem:[#allocation11_spill] sm:$0xff] %v3051_v10 }
 0x17c   :  { %3751 = vst [vmem:[#allocation30_spill] sm:$0xff] %v3093_v17 }
 0x17d   :  { %v532_v11 = vpop.f32.mrf.mxu3 }
 0x17f   :  { %v3053_v18 = vpop.f32.mrf.mxu1 }
 0x180   :  { %3733 = vst [vmem:[#allocation12_spill] sm:$0xff] %v3053_v18 }
 0x182   :  { %v3057_v24 = vpop.f32.mrf.mxu2  ;;  %v3103_v52 = vpop.f32.mrf.mxu0 }
 0x183   :  { %3735 = vst [vmem:[#allocation14_spill] sm:$0xff] %v3057_v24 }
 0x184   :  { %3754 = vst [vmem:[#allocation33_spill] sm:$0xff] %v3103_v52  ;;  %v412_v52 = vadd.f32 %v411_v36, %v324_v61 }
 0x185   :  { %v3059_v25 = vpop.f32.mrf.mxu3 }
 0x186   :  { %3736 = vst [vmem:[#allocation15_spill] sm:$0xff] %v3059_v25 }
 0x187   :  { %v3061_v19 = vpop.f32.mrf.mxu1 }
 0x188   :  { %3737 = vst [vmem:[#allocation16_spill] sm:$0xff] %v3061_v19 }
 0x18a   :  { %v3063_v29 = vpop.f32.mrf.mxu2  ;;  %v3109_v20 = vpop.f32.mrf.mxu0 }
 0x18b   :  { %3738 = vst [vmem:[#allocation17_spill] sm:$0xff] %v3063_v29 }
 0x18c   :  { %3756 = vst [vmem:[#allocation35_spill] sm:$0xff] %v3109_v20  ;;  %v547_v20 = vadd.f32 %v529_v5, %v412_v52  ;;  %v3771_v52 = vld [vmem:[#allocation33_spill] sm:$0xff] }
 0x18d   :  { %v3067_v23 = vpop.f32.mrf.mxu3 }
 0x18e   :  { %3740 = vst [vmem:[#allocation19_spill] sm:$0xff] %v3067_v23 }
 0x18f   :  { %v3069_v30 = vpop.f32.mrf.mxu1 }
 0x190   :  { %3741 = vst [vmem:[#allocation20_spill] sm:$0xff] %v3069_v30 }
 0x192   :  { %v3071_v47 = vpop.f32.mrf.mxu2  ;;  %v3115_v37 = vpop.f32.mrf.mxu0 }
 0x193   :  { %3742 = vst [vmem:[#allocation21_spill] sm:$0xff] %v3071_v47 }
 0x194   :  { %3758 = vst [vmem:[#allocation37_spill] sm:$0xff] %v3115_v37 }
 0x195   :  { %v3075_v41 = vpop.f32.mrf.mxu3 }
 0x196   :  { %3744 = vst [vmem:[#allocation23_spill] sm:$0xff] %v3075_v41 }
 0x197   :  { %v3077_v42 = vpop.f32.mrf.mxu1 }
 0x198   :  { %3745 = vst [vmem:[#allocation24_spill] sm:$0xff] %v3077_v42  ;;  %v406_v42 = vadd.f32 %v3019_v40, %v3027_v3 }
 0x19a   :  { %v3079_v63 = vpop.f32.mrf.mxu2  ;;  %v1051_v29 = vpop.f32.mrf.mxu0  ;;  %v545_v36 = vadd.f32 %v3037_v60, %v406_v42  ;;  %v3762_v42 = vld [vmem:[#allocation8_spill] sm:$0xff] }
 0x19b   :  { %3746 = vst [vmem:[#allocation25_spill] sm:$0xff] %v3079_v63 }
 0x19d   :  { %v3081_v48 = vpop.f32.mrf.mxu3 }
 0x19e   :  { %3747 = vst [vmem:[#allocation26_spill] sm:$0xff] %v3081_v48 }
 0x19f   :  { %v3085_v43 = vpop.f32.mrf.mxu1 }
 0x1a2   :  { %v3087_v0 = vpop.f32.mrf.mxu2 }
 0x1a3   :  { %3749 = vst [vmem:[#allocation28_spill] sm:$0xff] %v3087_v0 }
 0x1a5   :  { %v3089_v1 = vpop.f32.mrf.mxu3 }
 0x1a6   :  { %3750 = vst [vmem:[#allocation29_spill] sm:$0xff] %v3089_v1  ;;  %v1054_v1 = vpop.f32.mrf.mxu0 }
 0x1a7   :  { %v3091_v16 = vpop.f32.mrf.mxu1 }
 0x1aa   :  { %v3095_v44 = vpop.f32.mrf.mxu2 }
 0x1ab   :  { %3752 = vst [vmem:[#allocation31_spill] sm:$0xff] %v3095_v44  ;;  %v403_v44 = vadd.f32 %v3007_v14, %v3015_v39 }
 0x1ad   :  { %v3097_v51 = vpop.f32.mrf.mxu3  ;;  %v544_v35 = vadd.f32 %v3025_v31, %v403_v44  ;;  %v3769_v44 = vld [vmem:[#allocation25_spill] sm:$0xff] }
 0x1ae   :  { %3753 = vst [vmem:[#allocation32_spill] sm:$0xff] %v3097_v51  ;;  %v415_v51 = vadd.f32 %v414_v62, %v327_v9  ;;  %v1057_v63 = vpop.f32.mrf.mxu0  ;;  %v400_v62 = vadd.f32 %v2995_v55, %v3003_v13  ;;  %v542_v55 = vadd.f32 %v3001_v38, %v397_v45 }
 0x1af   :  { %v3099_v33 = vpop.f32.mrf.mxu1 }
 0x1b0   :  { %v543_v40 = vadd.f32 %v3013_v2, %v400_v62 }
 0x1b2   :  { %v3101_v34 = vpop.f32.mrf.mxu2 }
 0x1b5   :  { %v3105_v6 = vpop.f32.mrf.mxu3 }
 0x1b6   :  { %3755 = vst [vmem:[#allocation34_spill] sm:$0xff] %v3105_v6  ;;  %v548_v6 = vadd.f32 %v532_v11, %v415_v51  ;;  %v1060_v13 = vpop.f32.mrf.mxu0 }
 0x1b7   :  { %v646_v57 = vpop.f32.mrf.mxu1 }
 0x1b8   :  { %v674_v2 = vadd.f32 %v646_v57, %v542_v55  ;;  %v3781_v55 = vld [vmem:[#allocation27_spill] sm:$0xff] }
 0x1ba   :  { %v3107_v21 = vpop.f32.mrf.mxu2 }
 0x1bd   :  { %v3111_v25 = vpop.f32.mrf.mxu3 }
 0x1be   :  { %3757 = vst [vmem:[#allocation36_spill] sm:$0xff] %v3111_v25 }
 0x1bf   :  { %v649_v22 = vpop.f32.mrf.mxu1 }
 0x1c0   :  { %v675_v31 = vadd.f32 %v649_v22, %v543_v40  ;;  %v3777_v40 = vld [vmem:[#allocation5_spill] sm:$0xff] }
 0x1c2   :  { %v784_v23 = vpop.f32.mrf.mxu2 }
 0x1c5   :  { %v3113_v10 = vpop.f32.mrf.mxu3 }
 0x1c7   :  { %v652_v41 = vpop.f32.mrf.mxu1 }
 0x1c8   :  { %v676_v58 = vadd.f32 %v652_v41, %v544_v35 }
 0x1ca   :  { %v787_v24 = vpop.f32.mrf.mxu2 }
 0x1cd   :  { %v916_v49 = vpop.f32.mrf.mxu3 }
 0x1cf   :  { %v655_v48 = vpop.f32.mrf.mxu1 }
 0x1d0   :  { %v677_v5 = vadd.f32 %v655_v48, %v545_v36  ;;  %v3764_v48 = vld [vmem:[#allocation28_spill] sm:$0xff]  ;;  %v3772_v36 = vld [vmem:[#allocation6_spill] sm:$0xff] }
 0x1d2   :  { %v790_v15 = vpop.f32.mrf.mxu2 }
 0x1d5   :  { %v919_v18 = vpop.f32.mrf.mxu3 }
 0x1d7   :  { %v658_v17 = vpop.f32.mrf.mxu1 }
 0x1d8   :  { %v678_v61 = vadd.f32 %v658_v17, %v546_v59  ;;  %v394_v59 = vadd.f32 %v2971_v26, %v2979_v27  ;;  %v388_v26 = vadd.f32 %v2947_v56, %v2955_v53  ;;  %v540_v27 = vadd.f32 %v2977_v50, %v391_v28  ;;  %v3759_v53 = vld [vmem:[#allocation31_spill] sm:$0xff]  ;;  %v3768_v17 = vld [vmem:[#allocation20_spill] sm:$0xff]  ;;  %v3784_v28 = vld [vmem:[#allocation22_spill] sm:$0xff] }
 0x1da   :  { %v793_v32 = vpop.f32.mrf.mxu2  ;;  %v810_v14 = vadd.f32 %v790_v15, %v678_v61  ;;  %v541_v54 = vadd.f32 %v2989_v12, %v394_v59  ;;  %v539_v46 = vadd.f32 %v2965_v7, %v388_v26  ;;  %v672_v8 = vadd.f32 %v3091_v16, %v540_v27  ;;  %v3766_v16 = vld [vmem:[#allocation35_spill] sm:$0xff]  ;;  %v3773_v61 = vld [vmem:[#allocation16_spill] sm:$0xff]  ;;  %v3787_v26 = vld [vmem:[#allocation18_spill] sm:$0xff] }
 0x1db   :  { %v806_v12 = vadd.f32 %v3101_v34, %v674_v2  ;;  %v668_v62 = vadd.f32 %v3773_v61, %v3772_v36  ;;  %v3785_v2 = vld [vmem:[#allocation11_spill] sm:$0xff] }
 0x1dc   :  { %v673_v38 = vadd.f32 %v3099_v33, %v541_v54  ;;  %v671_v56 = vadd.f32 %v3085_v43, %v539_v46  ;;  %v3770_v33 = vld [vmem:[#allocation32_spill] sm:$0xff]  ;;  %v3790_v46 = vld [vmem:[#allocation10_spill] sm:$0xff] }
 0x1dd   :  { %v922_v47 = vpop.f32.mrf.mxu3 }
 0x1de   :  { %v805_v50 = vadd.f32 %v3759_v53, %v673_v38  ;;  %v803_v51 = vadd.f32 %v3769_v44, %v671_v56  ;;  %v3788_v38 = vld [vmem:[#allocation15_spill] sm:$0xff]  ;;  %v1078_v56 = vld [vmem:[%s3720_s6 + $0x8] sm:$0xff] }
 0x1df   :  { %v661_v19 = vpop.f32.mrf.mxu1  ;;  %v1079_v53 = vld [vmem:[%s3720_s6 + $0x10] sm:$0xff] }
 0x1e0   :  { %v679_v37 = vadd.f32 %v661_v19, %v547_v20  ;;  %v809_v20 = vadd.f32 %v787_v24, %v677_v5  ;;  %v808_v19 = vadd.f32 %v784_v23, %v676_v58  ;;  %v807_v24 = vadd.f32 %v3107_v21, %v675_v31  ;;  %v3760_v23 = vld [vmem:[#allocation36_spill] sm:$0xff]  ;;  %v3761_v21 = vld [vmem:[#allocation37_spill] sm:$0xff]  ;;  %v3782_v31 = vld [vmem:[#allocation14_spill] sm:$0xff] }
 0x1e1   :  { %v3775_v5 = vld [vmem:[#allocation29_spill] sm:$0xff] }
 0x1e2   :  { %v796_v4 = vpop.f32.mrf.mxu2  ;;  %v811_v9 = vadd.f32 %v793_v32, %v679_v37  ;;  %v942_v32 = vadd.f32 %v922_v47, %v810_v14  ;;  %v941_v15 = vadd.f32 %v919_v18, %v809_v20  ;;  %v940_v22 = vadd.f32 %v916_v49, %v808_v19  ;;  %v3779_v14 = vld [vmem:[#allocation17_spill] sm:$0xff] }
 0x1e3   :  { %v939_v57 = vadd.f32 %v3113_v10, %v807_v24  ;;  %v938_v37 = vadd.f32 %v3760_v23, %v806_v12  ;;  %v804_v49 = vadd.f32 %v3764_v48, %v672_v8  ;;  %v800_v20 = vadd.f32 %v3782_v31, %v668_v62  ;;  %v3791_v12 = vld [vmem:[#allocation9_spill] sm:$0xff] }
 0x1e4   :  { %v1074_v47 = vadd.f32 %v1054_v1, %v942_v32  ;;  %v1073_v18 = vadd.f32 %v1051_v29, %v941_v15  ;;  %v1072_v41 = vadd.f32 %v3761_v21, %v940_v22  ;;  %v3767_v29 = vld [vmem:[#allocation7_spill] sm:$0xff]  ;;  %v3789_v22 = vld [vmem:[#allocation13_spill] sm:$0xff] }
 0x1e5   :  { %v925_v30 = vpop.f32.mrf.mxu3  ;;  %v1071_v10 = vadd.f32 %v3766_v16, %v939_v57  ;;  %v669_v43 = vadd.f32 %v3768_v17, %v3767_v29  ;;  %v936_v34 = vadd.f32 %v3770_v33, %v804_v49  ;;  %v3783_v32 = vld [vmem:[#allocation23_spill] sm:$0xff]  ;;  %v1081_v23 = vld [vmem:[%s3720_s6 + $0x20] sm:$0xff]  ;;  %v2515_v29 = vmov 54.0  }
 0x1e6   :  { %v943_v39 = vadd.f32 %v925_v30, %v811_v9  ;;  %v935_v9 = vadd.f32 %v3775_v5, %v803_v51  ;;  %v3786_v15 = vld [vmem:[#allocation19_spill] sm:$0xff]  ;;  %v3204_v49 = vld [vmem:[%s3724_s10] sm:$0xff]  ;;  %2473 = vrcp.f32 %v2515_v29 }
 0x1e7   :  { %v664_v0 = vpop.f32.mrf.mxu1  ;;  %v1083_v21 = vld [vmem:[%s3720_s6 + $0x30] sm:$0x3f] }
 0x1e8   :  { %v680_v25 = vadd.f32 %v664_v0, %v548_v6  ;;  %v1075_v30 = vadd.f32 %v1057_v63, %v943_v39  ;;  %v3763_v63 = vld [vmem:[#allocation24_spill] sm:$0xff]  ;;  %v3765_v0 = vld [vmem:[#allocation34_spill] sm:$0xff]  ;;  %v1070_v6 = vadd.f32 %v3771_v52, %v938_v37  ;;  %v801_v39 = vadd.f32 %v3779_v14, %v669_v43 }
 0x1e9   :  { %v670_v7 = vadd.f32 %v3763_v63, %v3762_v42  ;;  %v937_v1 = vadd.f32 %v3765_v0, %v805_v50  ;;  %v1067_v54 = vadd.f32 %v3784_v28, %v935_v9  ;;  %v1080_v50 = vld [vmem:[%s3720_s6 + $0x18] sm:$0xff]  ;;  %v1082_v37 = vld [vmem:[%s3720_s6 + $0x28] sm:$0xff]  ;;  %v1084_v0 = vperm.slane %v3204_v49, 1 }
 0x1ea   :  { %v812_v11 = vadd.f32 %v796_v4, %v680_v25  ;;  %v3774_v4 = vld [vmem:[#allocation21_spill] sm:$0xff] }
 0x1eb   :  { %v802_v35 = vadd.f32 %v3774_v4, %v670_v7 }
 0x1ec   :  { %v2474_v61 = vpop.eup %2473 }
 0x1ed   :  { %v928_v3 = vpop.f32.mrf.mxu3  ;;  %v1167_v9 = vmul.f32 54.0, %v2474_v61  ;;  %vm1171_vm10 = vweird.f32 %v2474_v61 }
 0x1ee   :  { %v944_v60 = vadd.f32 %v928_v3, %v812_v11  ;;  %v3776_v11 = vld [vmem:[#allocation30_spill] sm:$0xff]  ;;  %v3778_v3 = vld [vmem:[#allocation12_spill] sm:$0xff] }
 0x1ef   :  { %v1069_v45 = vadd.f32 %v3776_v11, %v937_v1  ;;  %v667_v58 = vadd.f32 %v3778_v3, %v3777_v40  ;;  %v1168_v14 = vsub.f32 1.0, %v1167_v9 }
 0x1f0   :  { %v1076_v25 = vadd.f32 %v1060_v13, %v944_v60  ;;  %v3780_v60 = vld [vmem:[#allocation26_spill] sm:$0xff]  ;;  %v1068_v13 = vadd.f32 %v3781_v55, %v936_v34 }
 0x1f1   :  { %v934_v59 = vadd.f32 %v3780_v60, %v802_v35  ;;  %v799_v19 = vadd.f32 %v3785_v2, %v667_v58 }
 0x1f2   :  { %1109 = vmatpush.msra.mxu1 %v1076_v25  ;;  %v933_v25 = vadd.f32 %v3783_v32, %v801_v39 }
 0x1f3   :  { %v1066_v27 = vadd.f32 %v3787_v26, %v934_v59  ;;  %v931_v24 = vadd.f32 %v3788_v38, %v799_v19  ;;  %v1169_v59 = vmul.f32 %v2474_v61, %v1168_v14 }
 0x1f4   :  { %1110 = vmatpush.msra.mxu1 %v1075_v30  ;;  %v932_v30 = vadd.f32 %v3786_v15, %v800_v20 }
 0x1f5   :  { %v1063_v57 = vadd.f32 %v3791_v12, %v931_v24  ;;  %v1170_v31 = vadd.f32 %v2474_v61, %v1169_v59 }
 0x1f6   :  { %1111 = vmatpush.msra.mxu1 %v1074_v47  ;;  %v1065_v47 = vadd.f32 %v3789_v22, %v933_v25  ;;  %v1064_v8 = vadd.f32 %v3790_v46, %v932_v30 }
 0x1f7   :  { %v1172_v25 = vsel %vm1171_vm10, %v2474_v61, %v1170_v31  ;;  %v1252_v61 = vld [vmem:[%s3717_s3 + $0x10] sm:$0xff] }
 0x1f8   :  { %1112 = vmatpush.msra.mxu1 %v1073_v18  ;;  %v1077_v18 = vld [vmem:[%s3720_s6] sm:$0xff] }
 0x1fa   :  { %1113 = vmatpush.msra.mxu1 %v1072_v41 }
 0x1fc   :  { %1114 = vmatpush.msra.mxu1 %v1071_v10 }
 0x1fe   :  { %1115 = vmatpush.msra.mxu1 %v1070_v6 }
 0x200   :  { %1116 = vmatpush.msra.mxu1 %v1069_v45 }
 0x202   :  { %1117 = vmatpush.msra.mxu1 %v1068_v13 }
 0x204   :  { %1118 = vmatpush.msra.mxu1 %v1067_v54 }
 0x206   :  { %1119 = vmatpush.msra.mxu1 %v1066_v27 }
 0x208   :  { %1120 = vmatpush.msra.mxu1 %v1065_v47 }
 0x20a   :  { %1121 = vmatpush.msra.mxu1 %v1064_v8 }
 0x20c   :  { %1122 = vmatpush.msra.mxu1 %v1063_v57 }
 0x20d   :  { %2397 = vmatmul.msk.f32.vlgmr.msra.gmra.mxu1 %vm1085_vm7, %v1077_v18 }
 0x215   :  { %2398 = vmatmul.msk.f32.gmra.mxu1 %vm1085_vm7, %v1078_v56 }
 0x21d   :  { %2399 = vmatmul.msk.f32.gmra.mxu1 %vm1085_vm7, %v1079_v53 }
 0x225   :  { %2400 = vmatmul.msk.f32.gmra.mxu1 %vm1085_vm7, %v1080_v50 }
 0x22d   :  { %2401 = vmatmul.msk.f32.gmra.mxu1 %vm1085_vm7, %v1081_v23 }
 0x235   :  { %2402 = vmatmul.msk.f32.gmra.mxu1 %vm1085_vm7, %v1082_v37 }
 0x23d   :  { %2403 = vmatmul.msk.f32.gmra.mxu1 %vm1085_vm7, %v1083_v21 }
 0x28a   :  { %v1124_v41 = vpop.f32.mrf.mxu1 }
 0x28b   :  { %v1125_v16 = vadd.f32 %v1124_v41, %v1084_v0 }
 0x28d   :  { %v1146_v51 = vsel %vm1145_vm8, %v1125_v16, 0.0 }
 0x292   :  { %v1127_v42 = vpop.f32.mrf.mxu1 }
 0x293   :  { %v1128_v1 = vadd.f32 %v1127_v42, %v1084_v0 }
 0x295   :  { %v1147_v17 = vsel %vm1145_vm8, %v1128_v1, 0.0 }
 0x296   :  { %v1148_v52 = vadd.f32 %v1147_v17, %v1146_v51 }
 0x29a   :  { %v1130_v63 = vpop.f32.mrf.mxu1 }
 0x29b   :  { %v1131_v10 = vadd.f32 %v1130_v63, %v1084_v0 }
 0x29d   :  { %v1149_v33 = vsel %vm1145_vm8, %v1131_v10, 0.0 }
 0x29e   :  { %v1150_v62 = vadd.f32 %v1149_v33, %v1148_v52  ;;  %v1253_v33 = vld [vmem:[%s3717_s3 + $0x18] sm:$0xff]  ;;  %v1250_v52 = vld [vmem:[%s3717_s3] sm:$0xff] }
 0x29f   :  { %1300 = vmatpush.msra.mxu2 %v1253_v33 }
 0x2a1   :  { %1301 = vmatpush.msra.mxu2 %v1252_v61 }
 0x2a2   :  { %v1133_v7 = vpop.f32.mrf.mxu1 }
 0x2a3   :  { %v1134_v43 = vadd.f32 %v1133_v7, %v1084_v0 }
 0x2a5   :  { %v1151_v6 = vsel %vm1145_vm8, %v1134_v43, 0.0 }
 0x2a6   :  { %v1152_v35 = vadd.f32 %v1151_v6, %v1150_v62  ;;  %v1368_v62 = vld [vmem:[%s3717_s3 + $0x20] sm:$0xff] }
 0x2aa   :  { %v1136_v48 = vpop.f32.mrf.mxu1 }
 0x2ab   :  { %v1137_v34 = vadd.f32 %v1136_v48, %v1084_v0 }
 0x2ad   :  { %v1153_v4 = vsel %vm1145_vm8, %v1137_v34, 0.0 }
 0x2ae   :  { %v1154_v11 = vadd.f32 %v1153_v4, %v1152_v35  ;;  %v1640_v4 = vld [vmem:[%s3717_s3 + $0x60] sm:$0xff] }
 0x2b2   :  { %v1139_v44 = vpop.f32.mrf.mxu1 }
 0x2b3   :  { %v1140_v36 = vadd.f32 %v1139_v44, %v1084_v0  ;;  %v1251_v44 = vld [vmem:[%s3717_s3 + $0x8] sm:$0xff] }
 0x2b4   :  { %1347 = vmatpush.msra.mxu3 %v1251_v44 }
 0x2b5   :  { %v1155_v5 = vsel %vm1145_vm8, %v1140_v36, 0.0 }
 0x2b6   :  { %v1156_v3 = vadd.f32 %v1155_v5, %v1154_v11  ;;  %1348 = vmatpush.msra.mxu3 %v1250_v52 }
 0x2ba   :  { %v1142_v45 = vpop.f32.mrf.mxu1 }
 0x2bb   :  { %v1143_v40 = vadd.f32 %v1142_v45, %v1084_v0 }
 0x2bd   :  { %v1158_v58 = vsel %vm1157_vm9, %v1143_v40, 0.0 }
 0x2be   :  { %v1159_v39 = vadd.f32 %v1158_v58, %v1156_v3 }
 0x2c0   :  { %v1160_v60 = vrot.slane %v1159_v39, 4 }
 0x2c2   :  { %v1161_v55 = vadd.f32 %v1160_v60, %v1159_v39  ;;  %v1228_v39 = vperm.slane %v3204_v49, 6 }
 0x2c4   :  { %v1162_v13 = vrot.slane %v1161_v55, 2 }
 0x2c6   :  { %v1163_v20 = vadd.f32 %v1162_v13, %v1161_v55 }
 0x2c8   :  { %v1164_v32 = vrot.slane %v1163_v20, 1 }
 0x2ca   :  { %v1165_v28 = vadd.f32 %v1164_v32, %v1163_v20 }
 0x2cc   :  { %v1173_v54 = vmul.f32 %v1172_v25, %v1165_v28 }
 0x2ce   :  { %v3214_v2 = vsub.f32 %v1125_v16, %v1173_v54  ;;  %v3216_v19 = vsub.f32 %v1128_v1, %v1173_v54  ;;  %v3218_v15 = vsub.f32 %v1131_v10, %v1173_v54  ;;  %v3220_v30 = vsub.f32 %v1134_v43, %v1173_v54 }
 0x2cf   :  { %v3222_v26 = vsub.f32 %v1137_v34, %v1173_v54  ;;  %v1179_v22 = vsub.f32 %v1140_v36, %v1173_v54  ;;  %v1180_v57 = vsub.f32 %v1143_v40, %v1173_v54  ;;  %v1369_v34 = vld [vmem:[%s3717_s3 + $0x28] sm:$0xff] }
 0x2d0   :  { %v1181_v27 = vmul.f32 %v3214_v2, %v3214_v2  ;;  %v1182_v38 = vmul.f32 %v3216_v19, %v3216_v19  ;;  %v1183_v24 = vmul.f32 %v3218_v15, %v3218_v15  ;;  %v1184_v47 = vmul.f32 %v3220_v30, %v3220_v30  ;;  %1409 = vmatpush.msra.mxu0 %v1369_v34  ;;  %v1641_v36 = vld [vmem:[%s3717_s3 + $0x68] sm:$0xff] }
 0x2d1   :  { %v1185_v18 = vmul.f32 %v3222_v26, %v3222_v26  ;;  %v1186_v50 = vmul.f32 %v1179_v22, %v1179_v22  ;;  %v1187_v21 = vmul.f32 %v1180_v57, %v1180_v57  ;;  %1681 = vmatpush.msrb.mxu1 %v1641_v36 }
 0x2d2   :  { %v1188_v46 = vsel %vm1145_vm8, %v1181_v27, 0.0  ;;  %v1189_v8 = vsel %vm1145_vm8, %v1182_v38, 0.0  ;;  %v1191_v56 = vsel %vm1145_vm8, %v1183_v24, 0.0  ;;  %v1193_v23 = vsel %vm1145_vm8, %v1184_v47, 0.0  ;;  %1410 = vmatpush.msra.mxu0 %v1368_v62 }
 0x2d3   :  { %v1190_v12 = vadd.f32 %v1189_v8, %v1188_v46  ;;  %v1195_v41 = vsel %vm1145_vm8, %v1185_v18, 0.0  ;;  %v1197_v63 = vsel %vm1145_vm8, %v1186_v50, 0.0  ;;  %v1199_v48 = vsel %vm1157_vm9, %v1187_v21, 0.0  ;;  %1682 = vmatpush.msrb.mxu1 %v1640_v4 }
 0x2d5   :  { %v1192_v53 = vadd.f32 %v1191_v56, %v1190_v12 }
 0x2d7   :  { %v1194_v37 = vadd.f32 %v1193_v23, %v1192_v53 }
 0x2d9   :  { %v1196_v42 = vadd.f32 %v1195_v41, %v1194_v37 }
 0x2db   :  { %v1198_v7 = vadd.f32 %v1197_v63, %v1196_v42 }
 0x2dd   :  { %v1200_v0 = vadd.f32 %v1199_v48, %v1198_v7 }
 0x2df   :  { %v1201_v1 = vrot.slane %v1200_v0, 4 }
 0x2e1   :  { %v1202_v16 = vadd.f32 %v1201_v1, %v1200_v0 }
 0x2e3   :  { %v1203_v10 = vrot.slane %v1202_v16, 2 }
 0x2e5   :  { %v1204_v29 = vadd.f32 %v1203_v10, %v1202_v16 }
 0x2e7   :  { %v1205_v17 = vrot.slane %v1204_v29, 1 }
 0x2e9   :  { %v1206_v43 = vadd.f32 %v1205_v17, %v1204_v29 }
 0x2eb   :  { %v1207_v51 = vmul.f32 %v1206_v43, %v1172_v25 }
 0x2ed   :  { %v1208_v6 = vadd.f32 1e-05, %v1207_v51 }
 0x2ef   :  { %2475 = vrsqrt.f32 %v1208_v6  ;;  %vm1215_vm12 = vweird.f32 %v1208_v6 }
 0x2f5   :  { %v2476_v35 = vpop.eup %2475 }
 0x2f6   :  { %v1210_v5 = vmul.f32 %v2476_v35, %v1208_v6  ;;  %vm1216_vm11 = vweird.f32 %v2476_v35 }
 0x2f7   :  { %vm1217_vm13 = vmor %vm1215_vm12, %vm1216_vm11  ;;  %vm2239_vm12 = vcmask 31744  }
 0x2f8   :  { %v1211_v9 = vmul.f32 %v2476_v35, %v1210_v5 }
 0x2fa   :  { %v1212_v11 = vmul.f32 0.5, %v1211_v9 }
 0x2fc   :  { %v1213_v45 = vsub.f32 1.5, %v1212_v11 }
 0x2fe   :  { %v1214_v40 = vmul.f32 %v2476_v35, %v1213_v45 }
 0x300   :  { %v1218_v3 = vsel %vm1217_vm13, %v2476_v35, %v1214_v40 }
 0x301   :  { %v1219_v58 = vmul.f32 %v3204_v49, %v1218_v3 }
 0x303   :  { %v1220_v14 = vperm.slane %v1219_v58, 5 }
 0x305   :  { %v1221_v60 = vmul.f32 %v1220_v14, %v3214_v2  ;;  %v1222_v59 = vmul.f32 %v1220_v14, %v3216_v19  ;;  %v1223_v55 = vmul.f32 %v1220_v14, %v3218_v15  ;;  %v1224_v13 = vmul.f32 %v1220_v14, %v3220_v30 }
 0x306   :  { %v1225_v31 = vmul.f32 %v1220_v14, %v3222_v26  ;;  %v1226_v20 = vmul.f32 %v1220_v14, %v1179_v22  ;;  %v1227_v32 = vmul.f32 %v1220_v14, %v1180_v57 }
 0x307   :  { %v1229_v25 = vadd.f32 %v1228_v39, %v1221_v60  ;;  %v1230_v28 = vadd.f32 %v1228_v39, %v1222_v59  ;;  %v1231_v54 = vadd.f32 %v1228_v39, %v1223_v55  ;;  %v1232_v27 = vadd.f32 %v1228_v39, %v1224_v13 }
 0x308   :  { %v1233_v38 = vadd.f32 %v1228_v39, %v1225_v31  ;;  %v1234_v24 = vadd.f32 %v1228_v39, %v1226_v20  ;;  %v1235_v47 = vadd.f32 %v1228_v39, %v1227_v32  ;;  %v1505_v31 = vld [vmem:[%s3717_s3 + $0x48] sm:$0xff]  ;;  %v1504_v20 = vld [vmem:[%s3717_s3 + $0x40] sm:$0xff]  ;;  %v1437_v32 = vld [vmem:[%s3717_s3 + $0x38] sm:$0xff] }
 0x309   :  { %v1237_v46 = vmul.f32 0.2, %v1230_v28  ;;  %v1238_v8 = vmul.f32 0.2, %v1231_v54  ;;  %v1239_v2 = vmul.f32 0.2, %v1232_v27  ;;  %1545 = vmatpush.msrb.mxu3 %v1505_v31  ;;  %1477 = vmatpush.msrb.mxu2 %v1437_v32 }
 0x30a   :  { %v1240_v12 = vmul.f32 0.2, %v1233_v38  ;;  %v1241_v19 = vmul.f32 0.2, %v1234_v24  ;;  %v1242_v18 = vmul.f32 0.2, %v1235_v47 }
 0x30b   :  { %v3272_v15 = vmax.f32 %v1230_v28, %v1237_v46  ;;  %v1236_v30 = vmul.f32 0.2, %v1229_v25  ;;  %v3274_v56 = vmax.f32 %v1231_v54, %v1238_v8  ;;  %v3276_v26 = vmax.f32 %v1232_v27, %v1239_v2  ;;  %1546 = vmatpush.msrb.mxu3 %v1504_v20 }
 0x30c   :  { %v3283_v23 = vmax.f32 %v1233_v38, %v1240_v12  ;;  %v3285_v37 = vmax.f32 %v1234_v24, %v1241_v19  ;;  %v3287_v21 = vmax.f32 %v1235_v47, %v1242_v18  ;;  %v1573_v19 = vld [vmem:[%s3717_s3 + $0x58] sm:$0xff]  ;;  %v1436_v18 = vld [vmem:[%s3717_s3 + $0x30] sm:$0xff] }
 0x30d   :  { %v3278_v22 = vmax.f32 %v1229_v25, %v1236_v30  ;;  %v1262_v57 = vrot.slane %v3272_v15, 1  ;;  %v1371_v53 = vrot.slane %v3272_v15, 2  ;;  %v1643_v50 = vrot.slane %v3272_v15, 6  ;;  %1613 = vmatpush.msrb.mxu0 %v1573_v19  ;;  %1478 = vmatpush.msrb.mxu2 %v1436_v18 }
 0x30e   :  { %v1266_v7 = vrot.slane %v3276_v26, 1  ;;  %v1375_v48 = vrot.slane %v3276_v26, 2  ;;  %v1264_v10 = vrot.slane %v3274_v56, 1  ;;  %v1647_v29 = vrot.slane %v3276_v26, 6 }
 0x30f   :  { %2410 = vmatmul.msk.f32.vlgmr.msra.gmra.mxu3 %vm1145_vm8, %v3278_v22  ;;  %v1261_v41 = vrot.slane %v3278_v22, 1  ;;  %v1370_v42 = vrot.slane %v3278_v22, 2  ;;  %v1642_v63 = vrot.slane %v3278_v22, 6  ;;  %v1268_v17 = vrot.slane %v3283_v23, 1 }
 0x310   :  { %v1377_v43 = vrot.slane %v3283_v23, 2  ;;  %v1649_v44 = vrot.slane %v3283_v23, 6  ;;  %v1270_v51 = vrot.slane %v3285_v37, 1  ;;  %v1379_v33 = vrot.slane %v3285_v37, 2 }
 0x311   :  { %v1263_v0 = vsel %vm213_vm1, %v1261_v41, %v1262_v57  ;;  %v1372_v1 = vsel %vm418_vm2, %v1370_v42, %v1371_v53  ;;  %v1644_v16 = vsel %vm946_vm3, %v1642_v63, %v1643_v50  ;;  %v1651_v34 = vrot.slane %v3285_v37, 6 }
 0x312   :  { %2404 = vmatmul.msk.f32.vlgmr.msra.gmra.mxu2 %vm1145_vm8, %v1263_v0  ;;  %2416 = vmatmul.msk.f32.vlgmr.msra.gmra.mxu0 %vm1145_vm8, %v1372_v1  ;;  %v1272_v52 = vrot.slane %v3287_v21, 1  ;;  %v1373_v6 = vrot.slane %v3274_v56, 2  ;;  %v1269_v36 = vsel %vm213_vm1, %v1266_v7, %v1268_v17  ;;  %v1378_v61 = vsel %vm418_vm2, %v1375_v48, %v1377_v43 }
 0x313   :  { %2440 = vmatmul.msk.f32.vlgmr.msrb.gmra.mxu1 %vm1145_vm8, %v1644_v16  ;;  %v1650_v62 = vsel %vm946_vm3, %v1647_v29, %v1649_v44  ;;  %v1271_v4 = vsel %vm213_vm1, %v1268_v17, %v1270_v51  ;;  %v1380_v35 = vsel %vm418_vm2, %v1377_v43, %v1379_v33  ;;  %v1652_v5 = vsel %vm946_vm3, %v1649_v44, %v1651_v34 }
 0x314   :  { %v1273_v9 = vsel %vm213_vm1, %v1270_v51, %v1272_v52  ;;  %v1645_v11 = vrot.slane %v3274_v56, 6  ;;  %v1381_v45 = vrot.slane %v3287_v21, 2  ;;  %v1653_v40 = vrot.slane %v3287_v21, 6 }
 0x315   :  { %v1265_v14 = vsel %vm213_vm1, %v1262_v57, %v1264_v10  ;;  %v1374_v39 = vsel %vm418_vm2, %v1371_v53, %v1373_v6  ;;  %v1511_v59 = vrot.slane %v3276_v26, 4  ;;  %v1443_v55 = vrot.slane %v3276_v26, 3 }
 0x316   :  { %v1382_v3 = vsel %vm418_vm2, %v1379_v33, %v1381_v45  ;;  %v1654_v58 = vsel %vm946_vm3, %v1651_v34, %v1653_v40  ;;  %v1646_v60 = vsel %vm946_vm3, %v1643_v50, %v1645_v11  ;;  %v1579_v13 = vrot.slane %v3276_v26, 5  ;;  %v1572_v50 = vld [vmem:[%s3717_s3 + $0x50] sm:$0xff] }
 0x317   :  { %2411 = vmatmul.msk.f32.gmra.mxu3 %vm1145_vm8, %v3272_v15  ;;  %v1513_v25 = vrot.slane %v3283_v23, 4  ;;  %v1445_v28 = vrot.slane %v3283_v23, 3  ;;  %v1581_v54 = vrot.slane %v3283_v23, 5  ;;  %v1515_v24 = vrot.slane %v3285_v37, 4  ;;  %1614 = vmatpush.msrb.mxu0 %v1572_v50 }
 0x318   :  { %v1447_v47 = vrot.slane %v3285_v37, 3  ;;  %v1583_v8 = vrot.slane %v3285_v37, 5  ;;  %v1517_v2 = vrot.slane %v3287_v21, 4  ;;  %v1449_v12 = vrot.slane %v3287_v21, 3 }
 0x319   :  { %v3358_v27 = vsel %vm682_vm4, %v1511_v59, %v1513_v25  ;;  %v3363_v38 = vsel %vm550_vm5, %v1443_v55, %v1445_v28  ;;  %v3370_v46 = vsel %vm814_vm6, %v1579_v13, %v1581_v54  ;;  %v1516_v30 = vsel %vm682_vm4, %v1513_v25, %v1515_v24 }
 0x31a   :  { %2405 = vmatmul.msk.f32.gmra.mxu2 %vm1145_vm8, %v1265_v14  ;;  %2417 = vmatmul.msk.f32.gmra.mxu0 %vm1145_vm8, %v1374_v39  ;;  %v1448_v57 = vsel %vm550_vm5, %v1445_v28, %v1447_v47  ;;  %v1585_v53 = vrot.slane %v3287_v21, 5  ;;  %v1584_v41 = vsel %vm814_vm6, %v1581_v54, %v1583_v8  ;;  %v1518_v42 = vsel %vm682_vm4, %v1515_v24, %v1517_v2 }
 0x31b   :  { %2441 = vmatmul.msk.f32.gmra.mxu1 %vm1145_vm8, %v1646_v60  ;;  %v1450_v63 = vsel %vm550_vm5, %v1447_v47, %v1449_v12  ;;  %v1267_v0 = vsel %vm213_vm1, %v1264_v10, %v1266_v7  ;;  %v1376_v21 = vsel %vm418_vm2, %v1373_v6, %v1375_v48  ;;  %v1648_v16 = vsel %vm946_vm3, %v1645_v11, %v1647_v29 }
 0x31c   :  { %v1586_v1 = vsel %vm814_vm6, %v1583_v8, %v1585_v53  ;;  %v1506_v7 = vrot.slane %v3278_v22, 4  ;;  %v1507_v48 = vrot.slane %v3272_v15, 4  ;;  %v1439_v10 = vrot.slane %v3272_v15, 3 }
 0x31d   :  { %v1574_v29 = vrot.slane %v3278_v22, 5  ;;  %v1575_v17 = vrot.slane %v3272_v15, 5  ;;  %v1509_v51 = vrot.slane %v3274_v56, 4  ;;  %v1441_v33 = vrot.slane %v3274_v56, 3 }
 0x31f   :  { %2412 = vmatmul.msk.f32.gmra.mxu3 %vm1145_vm8, %v3274_v56  ;;  %v1576_v44 = vsel %vm814_vm6, %v1574_v29, %v1575_v17  ;;  %v1510_v15 = vsel %vm682_vm4, %v1507_v48, %v1509_v51  ;;  %v1442_v34 = vsel %vm550_vm5, %v1439_v10, %v1441_v33  ;;  %v1512_v6 = vsel %vm682_vm4, %v1509_v51, %v1511_v59 }
 0x322   :  { %2406 = vmatmul.msk.f32.gmra.mxu2 %vm1145_vm8, %v1267_v0  ;;  %2418 = vmatmul.msk.f32.gmra.mxu0 %vm1145_vm8, %v1376_v21 }
 0x323   :  { %2442 = vmatmul.msk.f32.gmra.mxu1 %vm1145_vm8, %v1648_v16 }
 0x327   :  { %2413 = vmatmul.msk.f32.gmra.mxu3 %vm1145_vm8, %v3276_v26 }
 0x32a   :  { %2407 = vmatmul.msk.f32.gmra.mxu2 %vm1145_vm8, %v1269_v36  ;;  %2419 = vmatmul.msk.f32.gmra.mxu0 %vm1145_vm8, %v1378_v61 }
 0x32b   :  { %2443 = vmatmul.msk.f32.gmra.mxu1 %vm1145_vm8, %v1650_v62 }
 0x32f   :  { %2414 = vmatmul.msk.f32.gmra.mxu3 %vm1145_vm8, %v3283_v23  ;;  %v1438_v23 = vrot.slane %v3278_v22, 3  ;;  %v1577_v22 = vrot.slane %v3274_v56, 5  ;;  %v1444_v56 = vsel %vm550_vm5, %v1441_v33, %v1443_v55 }
 0x331   :  { %v1440_v43 = vsel %vm550_vm5, %v1438_v23, %v1439_v10  ;;  %v1578_v52 = vsel %vm814_vm6, %v1575_v17, %v1577_v22  ;;  %v1580_v36 = vsel %vm814_vm6, %v1577_v22, %v1579_v13 }
 0x332   :  { %2408 = vmatmul.msk.f32.gmra.mxu2 %vm1145_vm8, %v1271_v4  ;;  %2420 = vmatmul.msk.f32.gmra.mxu0 %vm1145_vm8, %v1380_v35 }
 0x333   :  { %2444 = vmatmul.msk.f32.gmra.mxu1 %vm1145_vm8, %v1652_v5 }
 0x337   :  { %2415 = vmatmul.msk.f32.gmra.mxu3 %vm1145_vm8, %v3285_v37  ;;  %v1508_v37 = vsel %vm682_vm4, %v1506_v7, %v1507_v48 }
 0x33a   :  { %2409 = vmatmul.msk.f32.gmra.mxu2 %vm1145_vm8, %v1273_v9  ;;  %2421 = vmatmul.msk.f32.gmra.mxu0 %vm1145_vm8, %v1382_v3 }
 0x33b   :  { %2445 = vmatmul.msk.f32.gmra.mxu1 %vm1145_vm8, %v1654_v58 }
 0x33f   :  { %2428 = vmatmul.msk.f32.vlgmr.msrb.gmra.mxu3 %vm1145_vm8, %v1508_v37 }
 0x342   :  { %2422 = vmatmul.msk.f32.vlgmr.msrb.gmra.mxu2 %vm1145_vm8, %v1440_v43  ;;  %2434 = vmatmul.msk.f32.vlgmr.msrb.gmra.mxu0 %vm1145_vm8, %v1576_v44 }
 0x347   :  { %2429 = vmatmul.msk.f32.gmra.mxu3 %vm1145_vm8, %v1510_v15 }
 0x34a   :  { %2423 = vmatmul.msk.f32.gmra.mxu2 %vm1145_vm8, %v1442_v34  ;;  %2435 = vmatmul.msk.f32.gmra.mxu0 %vm1145_vm8, %v1578_v52 }
 0x34f   :  { %2430 = vmatmul.msk.f32.gmra.mxu3 %vm1145_vm8, %v1512_v6 }
 0x352   :  { %2424 = vmatmul.msk.f32.gmra.mxu2 %vm1145_vm8, %v1444_v56  ;;  %2436 = vmatmul.msk.f32.gmra.mxu0 %vm1145_vm8, %v1580_v36 }
 0x357   :  { %2431 = vmatmul.msk.f32.gmra.mxu3 %vm1145_vm8, %v3358_v27 }
 0x35a   :  { %2425 = vmatmul.msk.f32.gmra.mxu2 %vm1145_vm8, %v3363_v38  ;;  %2437 = vmatmul.msk.f32.gmra.mxu0 %vm1145_vm8, %v3370_v46 }
 0x35f   :  { %2432 = vmatmul.msk.f32.gmra.mxu3 %vm1145_vm8, %v1516_v30 }
 0x362   :  { %2426 = vmatmul.msk.f32.gmra.mxu2 %vm1145_vm8, %v1448_v57  ;;  %2438 = vmatmul.msk.f32.gmra.mxu0 %vm1145_vm8, %v1584_v41 }
 0x367   :  { %2433 = vmatmul.msk.f32.gmra.mxu3 %vm1145_vm8, %v1518_v42 }
 0x36a   :  { %2427 = vmatmul.msk.f32.gmra.mxu2 %vm1145_vm8, %v1450_v63  ;;  %2439 = vmatmul.msk.f32.gmra.mxu0 %vm1145_vm8, %v1586_v1 }
 0x38f   :  { %v1412_v26 = vpop.f32.mrf.mxu0 }
 0x390   :  { %v1684_v38 = vpop.f32.mrf.mxu1 }
 0x392   :  { %v1350_v61 = vpop.f32.mrf.mxu3 }
 0x395   :  { %v1303_v62 = vpop.f32.mrf.mxu2 }
 0x396   :  { %v1351_v4 = vadd.f32 %v1350_v61, %v1303_v62 }
 0x397   :  { %v1415_v35 = vpop.f32.mrf.mxu0 }
 0x398   :  { %v1430_v5 = vadd.f32 %v1412_v26, %v1351_v4  ;;  %v1687_v2 = vpop.f32.mrf.mxu1 }
 0x39a   :  { %v1353_v9 = vpop.f32.mrf.mxu3 }
 0x39d   :  { %v1306_v11 = vpop.f32.mrf.mxu2 }
 0x39e   :  { %v1354_v45 = vadd.f32 %v1353_v9, %v1306_v11 }
 0x39f   :  { %v1418_v40 = vpop.f32.mrf.mxu0 }
 0x3a0   :  { %v1431_v3 = vadd.f32 %v1415_v35, %v1354_v45  ;;  %v1690_v30 = vpop.f32.mrf.mxu1 }
 0x3a2   :  { %v1356_v58 = vpop.f32.mrf.mxu3 }
 0x3a5   :  { %v1309_v14 = vpop.f32.mrf.mxu2 }
 0x3a6   :  { %v1357_v39 = vadd.f32 %v1356_v58, %v1309_v14 }
 0x3a7   :  { %v1421_v60 = vpop.f32.mrf.mxu0 }
 0x3a8   :  { %v1432_v59 = vadd.f32 %v1418_v40, %v1357_v39  ;;  %v1693_v42 = vpop.f32.mrf.mxu1 }
 0x3aa   :  { %v1359_v55 = vpop.f32.mrf.mxu3 }
 0x3ad   :  { %v1312_v13 = vpop.f32.mrf.mxu2 }
 0x3ae   :  { %v1360_v1 = vadd.f32 %v1359_v55, %v1312_v13  ;;  %v1709_v55 = vld [vmem:[%s3721_s7 + $0x8] sm:$0xff]  ;;  %v1710_v13 = vld [vmem:[%s3721_s7 + $0x10] sm:$0x3f] }
 0x3af   :  { %v1424_v31 = vpop.f32.mrf.mxu0 }
 0x3b0   :  { %v1696_v23 = vpop.f32.mrf.mxu1  ;;  %v1433_v10 = vadd.f32 %v1421_v60, %v1360_v1 }
 0x3b2   :  { %v1362_v20 = vpop.f32.mrf.mxu3 }
 0x3b5   :  { %v1315_v32 = vpop.f32.mrf.mxu2 }
 0x3b6   :  { %v1363_v63 = vadd.f32 %v1362_v20, %v1315_v32  ;;  %v2516_v20 = vmov 22.0  }
 0x3b7   :  { %v1427_v25 = vpop.f32.mrf.mxu0  ;;  %2477 = vrcp.f32 %v2516_v20 }
 0x3b8   :  { %v1434_v48 = vadd.f32 %v1424_v31, %v1363_v63  ;;  %v1699_v62 = vpop.f32.mrf.mxu1 }
 0x3ba   :  { %v1365_v28 = vpop.f32.mrf.mxu3 }
 0x3bd   :  { %v1318_v54 = vpop.f32.mrf.mxu2 }
 0x3be   :  { %v1366_v7 = vadd.f32 %v1365_v28, %v1318_v54  ;;  %v2478_v54 = vpop.eup %2477 }
 0x3bf   :  { %v1616_v27 = vpop.f32.mrf.mxu0  ;;  %vm1766_vm7 = vweird.f32 %v2478_v54 }
 0x3c0   :  { %v1435_v37 = vadd.f32 %v1427_v25, %v1366_v7  ;;  %v1711_v25 = vperm.slane %v3204_v49, 2 }
 0x3c2   :  { %v1548_v24 = vpop.f32.mrf.mxu3 }
 0x3c5   :  { %v1480_v47 = vpop.f32.mrf.mxu2 }
 0x3c6   :  { %v1498_v56 = vadd.f32 %v1480_v47, %v1430_v5 }
 0x3c7   :  { %v1619_v46 = vpop.f32.mrf.mxu0 }
 0x3c8   :  { %v1566_v11 = vadd.f32 %v1548_v24, %v1498_v56  ;;  %v1762_v24 = vmul.f32 22.0, %v2478_v54 }
 0x3ca   :  { %v1551_v8 = vpop.f32.mrf.mxu3  ;;  %v1634_v39 = vadd.f32 %v1616_v27, %v1566_v11  ;;  %v1819_v11 = vld [vmem:[%s3718_s4 + $0x30] sm:$0xff] }
 0x3cc   :  { %v1702_v5 = vadd.f32 %v1684_v38, %v1634_v39  ;;  %v1813_v39 = vld [vmem:[%s3718_s4] sm:$0xff] }
 0x3cd   :  { %v1483_v12 = vpop.f32.mrf.mxu2 }
 0x3ce   :  { %v1499_v15 = vadd.f32 %v1483_v12, %v1431_v3 }
 0x3cf   :  { %v1622_v18 = vpop.f32.mrf.mxu0 }
 0x3d0   :  { %v1567_v4 = vadd.f32 %v1551_v8, %v1499_v15 }
 0x3d2   :  { %v1554_v19 = vpop.f32.mrf.mxu3  ;;  %v1635_v58 = vadd.f32 %v1619_v46, %v1567_v4  ;;  %v2038_v4 = vld [vmem:[%s3718_s4 + $0xd8] sm:$0xff] }
 0x3d4   :  { %v1703_v60 = vadd.f32 %v1687_v2, %v1635_v58  ;;  %v1818_v58 = vld [vmem:[%s3718_s4 + $0x28] sm:$0xff] }
 0x3d5   :  { %v1486_v57 = vpop.f32.mrf.mxu2 }
 0x3d6   :  { %v1500_v44 = vadd.f32 %v1486_v57, %v1432_v59  ;;  %v1708_v59 = vld [vmem:[%s3721_s7] sm:$0xff] }
 0x3d7   :  { %v1625_v50 = vpop.f32.mrf.mxu0 }
 0x3d8   :  { %v1568_v36 = vadd.f32 %v1554_v19, %v1500_v44  ;;  %v1763_v19 = vsub.f32 1.0, %v1762_v24  ;;  %v1999_v24 = vld [vmem:[%s3718_s4 + $0xb0] sm:$0xff] }
 0x3da   :  { %v1557_v53 = vpop.f32.mrf.mxu3  ;;  %v1636_v45 = vadd.f32 %v1622_v18, %v1568_v36  ;;  %v1764_v57 = vmul.f32 %v2478_v54, %v1763_v19  ;;  %v1816_v36 = vld [vmem:[%s3718_s4 + $0x18] sm:$0xff]  ;;  %v1997_v19 = vld [vmem:[%s3718_s4 + $0xa0] sm:$0xff] }
 0x3db   :  { %1872 = vmatpush.msra.mxu0 %v1816_v36 }
 0x3dc   :  { %v1704_v3 = vadd.f32 %v1690_v30, %v1636_v45  ;;  %v1885_v45 = vld [vmem:[%s3718_s4 + $0x50] sm:$0xff] }
 0x3dd   :  { %v1489_v41 = vpop.f32.mrf.mxu2 }
 0x3de   :  { %v1501_v17 = vadd.f32 %v1489_v41, %v1433_v10  ;;  %v1765_v41 = vadd.f32 %v2478_v54, %v1764_v57 }
 0x3df   :  { %v1628_v16 = vpop.f32.mrf.mxu0 }
 0x3e0   :  { %v1569_v34 = vadd.f32 %v1557_v53, %v1501_v17 }
 0x3e2   :  { %v1560_v0 = vpop.f32.mrf.mxu3  ;;  %v1637_v35 = vadd.f32 %v1625_v50, %v1569_v34 }
 0x3e4   :  { %v1705_v14 = vadd.f32 %v1693_v42, %v1637_v35  ;;  %v1814_v35 = vld [vmem:[%s3718_s4 + $0x8] sm:$0xff] }
 0x3e5   :  { %v1492_v21 = vpop.f32.mrf.mxu2 }
 0x3e6   :  { %v1502_v29 = vadd.f32 %v1492_v21, %v1434_v48 }
 0x3e7   :  { %v1631_v6 = vpop.f32.mrf.mxu0 }
 0x3e8   :  { %v1570_v51 = vadd.f32 %v1560_v0, %v1502_v29  ;;  %v1767_v0 = vsel %vm1766_vm7, %v2478_v54, %v1765_v41  ;;  %v1960_v54 = vld [vmem:[%s3718_s4 + $0x88] sm:$0xff] }
 0x3ea   :  { %v1563_v22 = vpop.f32.mrf.mxu3  ;;  %v1638_v26 = vadd.f32 %v1628_v16, %v1570_v51 }
 0x3ec   :  { %v1706_v40 = vadd.f32 %v1696_v23, %v1638_v26  ;;  %v1815_v26 = vld [vmem:[%s3718_s4 + $0x10] sm:$0xff] }
 0x3ed   :  { %v1495_v43 = vpop.f32.mrf.mxu2  ;;  %1873 = vmatpush.msra.mxu0 %v1815_v26 }
 0x3ee   :  { %v1503_v33 = vadd.f32 %v1495_v43, %v1435_v37 }
 0x3ef   :  { %1874 = vmatpush.msra.mxu0 %v1814_v35 }
 0x3f0   :  { %v1571_v52 = vadd.f32 %v1563_v22, %v1503_v33 }
 0x3f1   :  { %1875 = vmatpush.msra.mxu0 %v1813_v39 }
 0x3f2   :  { %v1639_v61 = vadd.f32 %v1631_v6, %v1571_v52 }
 0x3f4   :  { %v1707_v9 = vadd.f32 %v1699_v62, %v1639_v61  ;;  %v1820_v61 = vld [vmem:[%s3718_s4 + $0x38] sm:$0xff] }
 0x3f5   :  { %1845 = vmatpush.msra.mxu3 %v1820_v61  ;;  %v1886_v62 = vld [vmem:[%s3718_s4 + $0x58] sm:$0xff] }
 0x3f6   :  { %1732 = vmatpush.msra.mxu2 %v1707_v9  ;;  %1908 = vmatpush.msra.mxu1 %v1886_v62 }
 0x3f7   :  { %1846 = vmatpush.msra.mxu3 %v1819_v11 }
 0x3f8   :  { %1733 = vmatpush.msra.mxu2 %v1706_v40  ;;  %v2037_v40 = vld [vmem:[%s3718_s4 + $0xd0] sm:$0xff]  ;;  %1909 = vmatpush.msra.mxu1 %v1885_v45 }
 0x3f9   :  { %1847 = vmatpush.msra.mxu3 %v1818_v58 }
 0x3fa   :  { %1734 = vmatpush.msra.mxu2 %v1705_v14  ;;  %v1884_v14 = vld [vmem:[%s3718_s4 + $0x48] sm:$0xff] }
 0x3fb   :  { %1910 = vmatpush.msra.mxu1 %v1884_v14 }
 0x3fc   :  { %1735 = vmatpush.msra.mxu2 %v1704_v3  ;;  %v2036_v3 = vld [vmem:[%s3718_s4 + $0xc8] sm:$0xff] }
 0x3fe   :  { %1736 = vmatpush.msra.mxu2 %v1703_v60  ;;  %v1817_v60 = vld [vmem:[%s3718_s4 + $0x20] sm:$0xff] }
 0x3ff   :  { %1848 = vmatpush.msra.mxu3 %v1817_v60 }
 0x400   :  { %1737 = vmatpush.msra.mxu2 %v1702_v5  ;;  %v1883_v5 = vld [vmem:[%s3718_s4 + $0x40] sm:$0xff] }
 0x401   :  { %2446 = vmatmul.msk.f32.vlgmr.msra.gmra.mxu2 %vm1712_vm14, %v1708_v59  ;;  %v2035_v59 = vld [vmem:[%s3718_s4 + $0xc0] sm:$0xff]  ;;  %1911 = vmatpush.msra.mxu1 %v1883_v5 }
 0x402   :  { %2060 = vmatpush.msrb.mxu2 %v2038_v4 }
 0x404   :  { %2061 = vmatpush.msrb.mxu2 %v2037_v40 }
 0x406   :  { %2062 = vmatpush.msrb.mxu2 %v2036_v3 }
 0x408   :  { %2063 = vmatpush.msrb.mxu2 %v2035_v59 }
 0x409   :  { %2447 = vmatmul.msk.f32.gmra.mxu2 %vm1712_vm14, %v1709_v55 }
 0x411   :  { %2448 = vmatmul.msk.f32.gmra.mxu2 %vm1712_vm14, %v1710_v13  ;;  %v1962_v13 = vld [vmem:[%s3718_s4 + $0x98] sm:$0xff] }
 0x412   :  { %1984 = vmatpush.msrb.mxu0 %v1962_v13 }
 0x484   :  { %v1739_v31 = vpop.f32.mrf.mxu2 }
 0x485   :  { %v1740_v27 = vadd.f32 %v1739_v31, %v1711_v25 }
 0x487   :  { %v1749_v46 = vsel %vm1748_vm15, %v1740_v27, 0.0 }
 0x48c   :  { %v1742_v32 = vpop.f32.mrf.mxu2 }
 0x48d   :  { %v1743_v28 = vadd.f32 %v1742_v32, %v1711_v25  ;;  %v1961_v32 = vld [vmem:[%s3718_s4 + $0x90] sm:$0xff] }
 0x48e   :  { %1985 = vmatpush.msrb.mxu0 %v1961_v32 }
 0x48f   :  { %v1750_v38 = vsel %vm1748_vm15, %v1743_v28, 0.0 }
 0x490   :  { %v1751_v2 = vadd.f32 %v1750_v38, %v1749_v46  ;;  %v1923_v38 = vld [vmem:[%s3718_s4 + $0x70] sm:$0xff]  ;;  %1986 = vmatpush.msrb.mxu0 %v1960_v54  ;;  %v1922_v46 = vld [vmem:[%s3718_s4 + $0x68] sm:$0xff] }
 0x494   :  { %v1745_v47 = vpop.f32.mrf.mxu2 }
 0x495   :  { %v1746_v8 = vadd.f32 %v1745_v47, %v1711_v25  ;;  %v1924_v25 = vld [vmem:[%s3718_s4 + $0x78] sm:$0xff]  ;;  %v1959_v47 = vld [vmem:[%s3718_s4 + $0x80] sm:$0xff] }
 0x496   :  { %1946 = vmatpush.msrb.mxu3 %v1924_v25  ;;  %1987 = vmatpush.msrb.mxu0 %v1959_v47 }
 0x497   :  { %v1753_v12 = vsel %vm1752_vm0, %v1746_v8, 0.0 }
 0x498   :  { %v1754_v18 = vadd.f32 %v1753_v12, %v1751_v2  ;;  %1947 = vmatpush.msrb.mxu3 %v1923_v38  ;;  %v1998_v2 = vld [vmem:[%s3718_s4 + $0xa8] sm:$0xff]  ;;  %v1921_v12 = vld [vmem:[%s3718_s4 + $0x60] sm:$0xff] }
 0x49a   :  { %v1755_v30 = vrot.slane %v1754_v18, 4  ;;  %1948 = vmatpush.msrb.mxu3 %v1922_v46 }
 0x49c   :  { %v1756_v53 = vadd.f32 %v1755_v30, %v1754_v18  ;;  %v3582_v30 = vld [vmem:[%s3724_s10 + $0x8] sm:$0xff]  ;;  %1949 = vmatpush.msrb.mxu3 %v1921_v12 }
 0x49d   :  { %v1803_v41 = vperm.slane %v3582_v30, 0 }
 0x49e   :  { %v1757_v50 = vrot.slane %v1756_v53, 2 }
 0x4a0   :  { %v1758_v42 = vadd.f32 %v1757_v50, %v1756_v53 }
 0x4a2   :  { %v1759_v63 = vrot.slane %v1758_v42, 1 }
 0x4a4   :  { %v1760_v21 = vadd.f32 %v1759_v63, %v1758_v42 }
 0x4a6   :  { %v1768_v1 = vmul.f32 %v1767_v0, %v1760_v21 }
 0x4a8   :  { %v3480_v16 = vsub.f32 %v1740_v27, %v1768_v1  ;;  %v3482_v7 = vsub.f32 %v1743_v28, %v1768_v1  ;;  %v3484_v48 = vsub.f32 %v1746_v8, %v1768_v1  ;;  %v2000_v28 = vld [vmem:[%s3718_s4 + $0xb8] sm:$0xff] }
 0x4a9   :  { %2022 = vmatpush.msrb.mxu1 %v2000_v28 }
 0x4aa   :  { %v1772_v23 = vmul.f32 %v3480_v16, %v3480_v16  ;;  %v1773_v10 = vmul.f32 %v3482_v7, %v3482_v7  ;;  %v1774_v29 = vmul.f32 %v3484_v48, %v3484_v48 }
 0x4ab   :  { %2023 = vmatpush.msrb.mxu1 %v1999_v24 }
 0x4ac   :  { %v1775_v17 = vsel %vm1748_vm15, %v1772_v23, 0.0  ;;  %v1776_v37 = vsel %vm1748_vm15, %v1773_v10, 0.0  ;;  %v1778_v44 = vsel %vm1752_vm0, %v1774_v29, 0.0 }
 0x4ad   :  { %v1777_v43 = vadd.f32 %v1776_v37, %v1775_v17  ;;  %2024 = vmatpush.msrb.mxu1 %v1998_v2 }
 0x4af   :  { %v1779_v51 = vadd.f32 %v1778_v44, %v1777_v43  ;;  %2025 = vmatpush.msrb.mxu1 %v1997_v19 }
 0x4b1   :  { %v1780_v33 = vrot.slane %v1779_v51, 4 }
 0x4b3   :  { %v1781_v22 = vadd.f32 %v1780_v33, %v1779_v51 }
 0x4b5   :  { %v1782_v15 = vrot.slane %v1781_v22, 2 }
 0x4b7   :  { %v1783_v34 = vadd.f32 %v1782_v15, %v1781_v22 }
 0x4b9   :  { %v1784_v52 = vrot.slane %v1783_v34, 1 }
 0x4bb   :  { %v1785_v6 = vadd.f32 %v1784_v52, %v1783_v34 }
 0x4bd   :  { %v1786_v56 = vmul.f32 %v1785_v6, %v1767_v0 }
 0x4bf   :  { %v1787_v9 = vadd.f32 1e-05, %v1786_v56 }
 0x4c1   :  { %2479 = vrsqrt.f32 %v1787_v9  ;;  %vm1794_vm10 = vweird.f32 %v1787_v9 }
 0x4c7   :  { %v2480_v55 = vpop.eup %2479 }
 0x4c8   :  { %v1789_v31 = vmul.f32 %v2480_v55, %v1787_v9  ;;  %vm1795_vm9 = vweird.f32 %v2480_v55 }
 0x4c9   :  { %vm1796_vm11 = vmor %vm1794_vm10, %vm1795_vm9 }
 0x4ca   :  { %v1790_v20 = vmul.f32 %v2480_v55, %v1789_v31 }
 0x4cc   :  { %v1791_v27 = vmul.f32 0.5, %v1790_v20 }
 0x4ce   :  { %v1792_v8 = vsub.f32 1.5, %v1791_v27 }
 0x4d0   :  { %v1793_v18 = vmul.f32 %v2480_v55, %v1792_v8 }
 0x4d2   :  { %v1797_v57 = vsel %vm1796_vm11, %v2480_v55, %v1793_v18 }
 0x4d3   :  { %v1798_v53 = vmul.f32 %v3204_v49, %v1797_v57 }
 0x4d5   :  { %v1799_v50 = vperm.slane %v1798_v53, 7 }
 0x4d7   :  { %v1800_v42 = vmul.f32 %v1799_v50, %v3480_v16  ;;  %v1801_v63 = vmul.f32 %v1799_v50, %v3482_v7  ;;  %v1802_v0 = vmul.f32 %v1799_v50, %v3484_v48 }
 0x4d9   :  { %v1804_v21 = vadd.f32 %v1803_v41, %v1800_v42  ;;  %v1805_v1 = vadd.f32 %v1803_v41, %v1801_v63  ;;  %v1806_v23 = vadd.f32 %v1803_v41, %v1802_v0 }
 0x4db   :  { %v1807_v10 = vmul.f32 0.2, %v1804_v21  ;;  %v1808_v29 = vmul.f32 0.2, %v1805_v1  ;;  %v1809_v17 = vmul.f32 0.2, %v1806_v23 }
 0x4dd   :  { %v1810_v37 = vmax.f32 %v1804_v21, %v1807_v10  ;;  %v1811_v43 = vmax.f32 %v1805_v1, %v1808_v29  ;;  %v1812_v15 = vmax.f32 %v1806_v23, %v1809_v17  ;;  %v2073_v23 = vld [vmem:[%s3722_s8] sm:$0x3f]  ;;  %v2517_v10 = vmov 6.0  }
 0x4de   :  { %2481 = vrcp.f32 %v2517_v10  ;;  %v3622_v17 = vld [vmem:[%s3724_s10] sm:$0xff]  ;;  %v2138_v10 = vperm.slane %v3582_v30, 2 }
 0x4df   :  { %2451 = vmatmul.msk.f32.vlgmr.msra.gmra.mxu0 %vm1748_vm15, %v1810_v37  ;;  %v1824_v49 = vrot.slane %v1810_v37, 1  ;;  %v1825_v44 = vrot.slane %v1811_v43, 1  ;;  %v1887_v51 = vrot.slane %v1810_v37, 2  ;;  %v1888_v33 = vrot.slane %v1811_v43, 2 }
 0x4e0   :  { %v2039_v22 = vrot.slane %v1810_v37, 6  ;;  %v2040_v16 = vrot.slane %v1811_v43, 6  ;;  %v1827_v52 = vrot.slane %v1812_v15, 1  ;;  %v1890_v6 = vrot.slane %v1812_v15, 2 }
 0x4e1   :  { %v1826_v7 = vsel %vm213_vm1, %v1824_v49, %v1825_v44  ;;  %v1889_v48 = vsel %vm418_vm2, %v1887_v51, %v1888_v33  ;;  %v2042_v56 = vrot.slane %v1812_v15, 6  ;;  %v1963_v62 = vrot.slane %v1810_v37, 4 }
 0x4e2   :  { %2449 = vmatmul.msk.f32.vlgmr.msra.gmra.mxu3 %vm1748_vm15, %v1826_v7  ;;  %2453 = vmatmul.msk.f32.vlgmr.msra.gmra.mxu1 %vm1748_vm15, %v1889_v48  ;;  %v2041_v34 = vsel %vm946_vm3, %v2039_v22, %v2040_v16  ;;  %v1828_v36 = vsel %vm213_vm1, %v1825_v44, %v1827_v52  ;;  %v1891_v26 = vsel %vm418_vm2, %v1888_v33, %v1890_v6  ;;  %v1964_v4 = vrot.slane %v1811_v43, 4 }
 0x4e3   :  { %2461 = vmatmul.msk.f32.vlgmr.msrb.gmra.mxu2 %vm1748_vm15, %v2041_v34  ;;  %v2043_v61 = vsel %vm946_vm3, %v2040_v16, %v2042_v56  ;;  %v1925_v35 = vrot.slane %v1810_v37, 3  ;;  %v1926_v9 = vrot.slane %v1811_v43, 3  ;;  %v2001_v11 = vrot.slane %v1810_v37, 5 }
 0x4e4   :  { %v2002_v45 = vrot.slane %v1811_v43, 5  ;;  %v1965_v40 = vsel %vm682_vm4, %v1963_v62, %v1964_v4  ;;  %v1966_v39 = vrot.slane %v1812_v15, 4  ;;  %v1928_v3 = vrot.slane %v1812_v15, 3  ;;  %v2482_v29 = vpop.eup %2481 }
 0x4e5   :  { %v1927_v58 = vsel %vm550_vm5, %v1925_v35, %v1926_v9  ;;  %v2004_v60 = vrot.slane %v1812_v15, 5  ;;  %v2074_v37 = vperm.slane %v3622_v17, 3  ;;  %vm2098_vm1 = vcmask 521216  }
 0x4e6   :  { %v2003_v14 = vsel %vm814_vm6, %v2001_v11, %v2002_v45  ;;  %v1967_v5 = vsel %vm682_vm4, %v1964_v4, %v1966_v39  ;;  %v1929_v59 = vsel %vm550_vm5, %v1926_v9, %v1928_v3  ;;  %vm2111_vm2 = vweird.f32 %v2482_v29  ;;  %v2212_v39 = vld [vmem:[%s3719_s5 + $0xb8] sm:$0xff]  ;;  %v2211_v3 = vld [vmem:[%s3719_s5 + $0xb0] sm:$0xff] }
 0x4e7   :  { %2452 = vmatmul.msk.f32.gmra.mxu0 %vm1748_vm15, %v1811_v43  ;;  %v2005_v55 = vsel %vm814_vm6, %v2002_v45, %v2004_v60  ;;  %v2107_v43 = vmul.f32 6.0, %v2482_v29  ;;  %v2157_v60 = vld [vmem:[%s3719_s5 + $0x78] sm:$0xff]  ;;  %2224 = vmatpush.msra.mxu2 %v2212_v39 }
 0x4e8   :  { %2171 = vmatpush.msra.mxu0 %v2157_v60 }
 0x4e9   :  { %v2108_v51 = vsub.f32 1.0, %v2107_v43  ;;  %2225 = vmatpush.msra.mxu2 %v2211_v3 }
 0x4ea   :  { %2450 = vmatmul.msk.f32.gmra.mxu3 %vm1748_vm15, %v1828_v36  ;;  %2454 = vmatmul.msk.f32.gmra.mxu1 %vm1748_vm15, %v1891_v26 }
 0x4eb   :  { %2462 = vmatmul.msk.f32.gmra.mxu2 %vm1748_vm15, %v2043_v61  ;;  %v2109_v16 = vmul.f32 %v2482_v29, %v2108_v51 }
 0x4ed   :  { %v2110_v48 = vadd.f32 %v2482_v29, %v2109_v16 }
 0x4ef   :  { %2457 = vmatmul.msk.f32.vlgmr.msrb.gmra.mxu0 %vm1748_vm15, %v1965_v40  ;;  %v2112_v6 = vsel %vm2111_vm2, %v2482_v29, %v2110_v48  ;;  %v2238_v48 = vperm.slane %v3622_v17, 4 }
 0x4f2   :  { %2455 = vmatmul.msk.f32.vlgmr.msrb.gmra.mxu3 %vm1748_vm15, %v1927_v58  ;;  %2459 = vmatmul.msk.f32.vlgmr.msrb.gmra.mxu1 %vm1748_vm15, %v2003_v14 }
 0x4f7   :  { %2458 = vmatmul.msk.f32.gmra.mxu0 %vm1748_vm15, %v1967_v5  ;;  %v2149_v5 = vld [vmem:[%s3719_s5 + $0x38] sm:$0xff] }
 0x4f8   :  { %2193 = vmatpush.msra.mxu1 %v2149_v5 }
 0x4fa   :  { %2456 = vmatmul.msk.f32.gmra.mxu3 %vm1748_vm15, %v1929_v59  ;;  %2460 = vmatmul.msk.f32.gmra.mxu1 %vm1748_vm15, %v2005_v55  ;;  %v2156_v59 = vld [vmem:[%s3719_s5 + $0x70] sm:$0xff]  ;;  %v2210_v55 = vld [vmem:[%s3719_s5 + $0xa8] sm:$0xff] }
 0x4fb   :  { %2172 = vmatpush.msra.mxu0 %v2156_v59  ;;  %2226 = vmatpush.msra.mxu2 %v2210_v55 }
 0x55c   :  { %v1877_v13 = vpop.f32.mrf.mxu0 }
 0x55f   :  { %v1913_v31 = vpop.f32.mrf.mxu1 }
 0x564   :  { %v1880_v32 = vpop.f32.mrf.mxu0 }
 0x565   :  { %v1850_v20 = vpop.f32.mrf.mxu3 }
 0x566   :  { %v1878_v54 = vadd.f32 %v1877_v13, %v1850_v20  ;;  %v2065_v8 = vpop.f32.mrf.mxu2  ;;  %v2148_v13 = vld [vmem:[%s3719_s5 + $0x30] sm:$0xff]  ;;  %v2147_v20 = vld [vmem:[%s3719_s5 + $0x28] sm:$0xff] }
 0x567   :  { %v1916_v25 = vpop.f32.mrf.mxu1  ;;  %2194 = vmatpush.msra.mxu1 %v2148_v13 }
 0x568   :  { %v1919_v46 = vadd.f32 %v1913_v31, %v1878_v54  ;;  %v2155_v31 = vld [vmem:[%s3719_s5 + $0x68] sm:$0xff]  ;;  %v2208_v54 = vld [vmem:[%s3719_s5 + $0x98] sm:$0xff] }
 0x569   :  { %2173 = vmatpush.msra.mxu0 %v2155_v31  ;;  %2195 = vmatpush.msra.mxu1 %v2147_v20 }
 0x56c   :  { %v1989_v27 = vpop.f32.mrf.mxu0 }
 0x56d   :  { %v1853_v28 = vpop.f32.mrf.mxu3 }
 0x56e   :  { %v1881_v47 = vadd.f32 %v1880_v32, %v1853_v28  ;;  %v2068_v0 = vpop.f32.mrf.mxu2  ;;  %v2209_v32 = vld [vmem:[%s3719_s5 + $0xa0] sm:$0xff] }
 0x56f   :  { %v2027_v24 = vpop.f32.mrf.mxu1  ;;  %v2146_v28 = vld [vmem:[%s3719_s5 + $0x20] sm:$0xff]  ;;  %2227 = vmatpush.msra.mxu2 %v2209_v32 }
 0x570   :  { %v1920_v12 = vadd.f32 %v1916_v25, %v1881_v47  ;;  %v2154_v25 = vld [vmem:[%s3719_s5 + $0x60] sm:$0xff]  ;;  %2196 = vmatpush.msra.mxu1 %v2146_v28  ;;  %v2207_v47 = vld [vmem:[%s3719_s5 + $0x90] sm:$0xff] }
 0x571   :  { %2174 = vmatpush.msra.mxu0 %v2154_v25  ;;  %2228 = vmatpush.msra.mxu2 %v2208_v54 }
 0x573   :  { %2229 = vmatpush.msra.mxu2 %v2207_v47 }
 0x574   :  { %v1992_v53 = vpop.f32.mrf.mxu0 }
 0x575   :  { %v1951_v38 = vpop.f32.mrf.mxu3 }
 0x576   :  { %v1957_v2 = vadd.f32 %v1951_v38, %v1919_v46  ;;  %v2145_v38 = vld [vmem:[%s3719_s5 + $0x18] sm:$0xff]  ;;  %v2152_v46 = vld [vmem:[%s3719_s5 + $0x50] sm:$0xff] }
 0x577   :  { %v2030_v41 = vpop.f32.mrf.mxu1  ;;  %2197 = vmatpush.msra.mxu1 %v2145_v38 }
 0x578   :  { %v1995_v18 = vadd.f32 %v1989_v27, %v1957_v2  ;;  %v2153_v27 = vld [vmem:[%s3719_s5 + $0x58] sm:$0xff]  ;;  %v2144_v2 = vld [vmem:[%s3719_s5 + $0x10] sm:$0xff] }
 0x579   :  { %2175 = vmatpush.msra.mxu0 %v2153_v27  ;;  %2198 = vmatpush.msra.mxu1 %v2144_v2 }
 0x57a   :  { %v2033_v42 = vadd.f32 %v2027_v24, %v1995_v18 }
 0x57b   :  { %2176 = vmatpush.msra.mxu0 %v2152_v46 }
 0x57c   :  { %v2071_v1 = vadd.f32 %v2065_v8, %v2033_v42  ;;  %v2142_v42 = vld [vmem:[%s3719_s5] sm:$0xff] }
 0x57d   :  { %v1954_v19 = vpop.f32.mrf.mxu3 }
 0x57e   :  { %v1958_v57 = vadd.f32 %v1954_v19, %v1920_v12  ;;  %v2206_v12 = vld [vmem:[%s3719_s5 + $0x88] sm:$0xff] }
 0x57f   :  { %v2151_v19 = vld [vmem:[%s3719_s5 + $0x48] sm:$0xff]  ;;  %2230 = vmatpush.msra.mxu2 %v2206_v12 }
 0x580   :  { %v1996_v50 = vadd.f32 %v1992_v53, %v1958_v57  ;;  %v2143_v57 = vld [vmem:[%s3719_s5 + $0x8] sm:$0xff]  ;;  %v2205_v53 = vld [vmem:[%s3719_s5 + $0x80] sm:$0xff]  ;;  %2177 = vmatpush.msra.mxu0 %v2151_v19 }
 0x581   :  { %2199 = vmatpush.msra.mxu1 %v2143_v57  ;;  %2231 = vmatpush.msra.mxu2 %v2205_v53 }
 0x582   :  { %v2034_v63 = vadd.f32 %v2030_v41, %v1996_v50  ;;  %v2150_v50 = vld [vmem:[%s3719_s5 + $0x40] sm:$0xff] }
 0x583   :  { %2178 = vmatpush.msra.mxu0 %v2150_v50  ;;  %2200 = vmatpush.msra.mxu1 %v2142_v42 }
 0x584   :  { %v2072_v21 = vadd.f32 %v2068_v0, %v2034_v63 }
 0x586   :  { %2092 = vmatpush.msra.mxu3 %v2072_v21 }
 0x588   :  { %2093 = vmatpush.msra.mxu3 %v2071_v1 }
 0x589   :  { %2463 = vmatmul.msk.f32.vlgmr.msra.gmra.mxu3 %vm1145_vm8, %v2073_v23  ;;  %vm2160_vm8 = vcmask 523264  }
 0x60c   :  { %v2095_v49 = vpop.f32.mrf.mxu3 }
 0x60d   :  { %v2096_v44 = vadd.f32 %v2095_v49, %v2074_v37 }
 0x60f   :  { %v2099_v33 = vsel %vm2098_vm1, %v2096_v44, 0.0 }
 0x610   :  { %v2100_v22 = vrot.slane %v2099_v33, 4 }
 0x612   :  { %v2101_v15 = vadd.f32 %v2100_v22, %v2099_v33 }
 0x614   :  { %v2102_v7 = vrot.slane %v2101_v15, 2 }
 0x616   :  { %v2103_v34 = vadd.f32 %v2102_v7, %v2101_v15 }
 0x618   :  { %v2104_v52 = vrot.slane %v2103_v34, 1 }
 0x61a   :  { %v2105_v56 = vadd.f32 %v2104_v52, %v2103_v34 }
 0x61c   :  { %v2113_v36 = vmul.f32 %v2112_v6, %v2105_v56 }
 0x61e   :  { %v3626_v26 = vsub.f32 %v2096_v44, %v2113_v36 }
 0x620   :  { %v2115_v61 = vmul.f32 %v3626_v26, %v3626_v26 }
 0x622   :  { %v2116_v62 = vsel %vm2098_vm1, %v2115_v61, 0.0 }
 0x623   :  { %v2117_v4 = vrot.slane %v2116_v62, 4 }
 0x625   :  { %v2118_v35 = vadd.f32 %v2117_v4, %v2116_v62 }
 0x627   :  { %v2119_v9 = vrot.slane %v2118_v35, 2 }
 0x629   :  { %v2120_v11 = vadd.f32 %v2119_v9, %v2118_v35 }
 0x62b   :  { %v2121_v45 = vrot.slane %v2120_v11, 1 }
 0x62d   :  { %v2122_v40 = vadd.f32 %v2121_v45, %v2120_v11 }
 0x62f   :  { %v2123_v58 = vmul.f32 %v2122_v40, %v2112_v6 }
 0x631   :  { %v2124_v14 = vadd.f32 1e-05, %v2123_v58 }
 0x633   :  { %2483 = vrsqrt.f32 %v2124_v14  ;;  %vm2131_vm5 = vweird.f32 %v2124_v14 }
 0x639   :  { %v2484_v24 = vpop.eup %2483 }
 0x63a   :  { %v2126_v8 = vmul.f32 %v2484_v24, %v2124_v14  ;;  %vm2132_vm3 = vweird.f32 %v2484_v24 }
 0x63b   :  { %vm2133_vm6 = vmor %vm2131_vm5, %vm2132_vm3 }
 0x63c   :  { %v2127_v18 = vmul.f32 %v2484_v24, %v2126_v8 }
 0x63e   :  { %v2128_v41 = vmul.f32 0.5, %v2127_v18 }
 0x640   :  { %v2129_v63 = vsub.f32 1.5, %v2128_v41 }
 0x642   :  { %v2130_v0 = vmul.f32 %v2484_v24, %v2129_v63 }
 0x644   :  { %v2134_v21 = vsel %vm2133_vm6, %v2484_v24, %v2130_v0 }
 0x645   :  { %v2135_v1 = vmul.f32 %v2134_v21, %v3582_v30  ;;  %v2237_v30 = vld [vmem:[%s3723_s9] sm:$0x3] }
 0x647   :  { %v2136_v23 = vperm.slane %v2135_v1, 1 }
 0x649   :  { %v2137_v29 = vmul.f32 %v2136_v23, %v3626_v26 }
 0x64b   :  { %v2139_v37 = vadd.f32 %v2138_v10, %v2137_v29 }
 0x64d   :  { %v2140_v43 = vmul.f32 0.2, %v2139_v37 }
 0x64f   :  { %v2141_v49 = vmax.f32 %v2139_v37, %v2140_v43 }
 0x651   :  { %v2159_v44 = vrot.slane %v2141_v49, 1  ;;  %v2213_v51 = vrot.slane %v2141_v49, 2  ;;  %2465 = vmatmul.msk.f32.vlgmr.msra.gmra.mxu1 %vm2160_vm8, %v2141_v49 }
 0x653   :  { %2466 = vmatmul.msk.f32.vlgmr.msra.gmra.mxu2 %vm2160_vm8, %v2213_v51  ;;  %2464 = vmatmul.msk.f32.vlgmr.msra.gmra.mxu0 %vm2160_vm8, %v2159_v44 }
 0x6ce   :  { %v2202_v22 = vpop.f32.mrf.mxu1 }
 0x6d0   :  { %v2180_v33 = vpop.f32.mrf.mxu0 }
 0x6d1   :  { %v2203_v16 = vadd.f32 %v2202_v22, %v2180_v33 }
 0x6d6   :  { %v2233_v15 = vpop.f32.mrf.mxu2 }
 0x6d7   :  { %v2236_v7 = vadd.f32 %v2233_v15, %v2203_v16 }
 0x6d9   :  { %2467 = vmatpush.msk.msrb.mxu3 %vm682_vm4, %v2236_v7 }
 0x6da   :  { %2468 = vmatmul.msk.f32.vlgmr.msrb.gmra.mxu3 %vm2239_vm12, %v2237_v30 }
 0x75d   :  { %v2263_v34 = vpop.f32.mrf.mxu3 }
 0x75e   :  { %v2264_v52 = vadd.f32 %v2263_v34, %v2238_v48 }
 0x760   :  { %2485 = vtanh.f32 %v2264_v52 }
 0x766   :  { %v2486_v6 = vpop.eup %2485 }
 0x767   :  { %2267 = vst [vmem:[#allocation2] sm:$0x3] %v2486_v6 }
 0x768   :  { %2278 = dma.vmem_to_hbm [thread:$0]  %s2274_s30, 32, %s2276_s13, [#allocation3]  }
 0x769   :  { %2513 = dma.done.wait [#allocation3], 32  }
 0x76a   :  { %2514 = vsyncadd [#allocation3], 4294967264 }
 0x76b   :  { %2283 = vsyncpa [#allocation3], 1 }

</bundles_post_ra>
